<compile_context>
chip_gen: v6e
topology: v6e:2x2x1
jax: 0.10.0
libtpu: 0.0.40
codegen_flags: <defaults>
</compile_context>

<pallas_src>
import jax
import jax.numpy as jnp
from jax.experimental import pallas as pl
from jax.experimental.pallas import tpu as pltpu

NUM_LAYERS = 5
_SUBLANE = 16  # bf16 output tile => batch tile must be a multiple of 16


def _round_up(x, m):
    return ((x + m - 1) // m) * m


def _cdiv(a, b):
    return -(-a // b)


def _choose_tiling(B, *, max_tb=2048):
    """Pick (tb, Bp): tb multiple of 16, Bp = tb * steps, steps even (>=2)
    whenever the batch is big enough, tb <= max_tb."""
    Bmin = _round_up(B, _SUBLANE)
    if Bmin <= _SUBLANE:
        return _SUBLANE, _SUBLANE          # tiny batch: single 16-row step
    steps = 2                               # even step count for v7x's 2 TCs
    while _round_up(_cdiv(Bmin, steps), _SUBLANE) > max_tb:
        steps += 2
    tb = _round_up(_cdiv(Bmin, steps), _SUBLANE)
    return tb, tb * steps


def encoder_kernel(x_ref, w1_ref, wr_ref, b_ref, o_ref):
    def act(z):
        # sigmoid(z) = 1 / (1 + exp(-z)); exp + approx-reciprocal both go to
        # the EUP slot, keeping the divide off the VALU critical path.
        return pl.reciprocal(1.0 + jnp.exp(-z), approx=True)

    # Layer 1: (TB, Cin)bf16 @ (Cin, Cout)bf16 -> f32 acc, + bias, sigmoid.
    h = jnp.dot(x_ref[...].astype(jnp.bfloat16), w1_ref[...],
                preferred_element_type=jnp.float32)
    h = act(h + b_ref[0:1, :])
    # Layers 2..NUM_LAYERS: (TB, Cout)bf16 @ (Cout, Cout)bf16 -> f32 acc.
    for l in range(NUM_LAYERS - 1):
        h = jnp.dot(h.astype(jnp.bfloat16), wr_ref[l],
                    preferred_element_type=jnp.float32)
        h = act(h + b_ref[l + 1:l + 2, :])
    o_ref[...] = h.astype(o_ref.dtype)      # bf16 output (half the HBM bytes)


def encoder_forward(x, w1, b1, w_rest, b_rest, *, max_tb=2048):
    B, Cin = x.shape
    Cout = w1.shape[1]

    # Weights in bf16 (native MXU rate, half the weight bytes); biases f32,
    # packed into one (8, Cout) array (rows 0..4 = b1..b5, rows 5..7 zero).
    w1 = w1.astype(jnp.bfloat16)
    w_rest = w_rest.astype(jnp.bfloat16)
    b_all = jnp.zeros((8, Cout), jnp.float32)
    b_all = b_all.at[0].set(b1.reshape(Cout).astype(jnp.float32))
    b_all = b_all.at[1:NUM_LAYERS].set(
        b_rest.reshape(NUM_LAYERS - 1, Cout).astype(jnp.float32))

    tb, Bp = _choose_tiling(B, max_tb=max_tb)
    xp = x if Bp == B else jnp.pad(x, ((0, Bp - B), (0, 0)))

    grid = (Bp // tb,)
    out = pl.pallas_call(
        encoder_kernel,
        out_shape=jax.ShapeDtypeStruct((Bp, Cout), jnp.bfloat16),
        grid_spec=pltpu.PrefetchScalarGridSpec(
            num_scalar_prefetch=0,
            grid=grid,
            in_specs=[
                pl.BlockSpec((tb, Cin), lambda i: (i, 0)),                        # x tile
                pl.BlockSpec((Cin, Cout), lambda i: (0, 0)),                      # W1 (bf16)
                pl.BlockSpec((NUM_LAYERS - 1, Cout, Cout), lambda i: (0, 0, 0)),  # W2..W5 (bf16)
                pl.BlockSpec((8, Cout), lambda i: (0, 0)),                        # packed biases
            ],
            out_specs=pl.BlockSpec((tb, Cout), lambda i: (i, 0)),
        ),
        compiler_params=pltpu.CompilerParams(
            dimension_semantics=("parallel",),  # batch tiles shard across TCs on v7x
        ),
    )(xp, w1, w_rest, b_all)
    return out[:B]


def reference_forward_f32(x, w1, b1, w_rest, b_rest):
    h = jax.nn.sigmoid(x @ w1 + b1)
    for l in range(NUM_LAYERS - 1):
        h = jax.nn.sigmoid(h @ w_rest[l] + b_rest[l])
    return h


def reference_forward_bf16(x, w1, b1, w_rest, b_rest):
    # Mirrors the kernel's bf16-operand / f32-accumulation arithmetic
    # (exact sigmoid; kernel additionally uses an approx reciprocal).
    h = jnp.dot(x.astype(jnp.bfloat16), w1.astype(jnp.bfloat16),
                preferred_element_type=jnp.float32)
    h = jax.nn.sigmoid(h + b1)
    for l in range(NUM_LAYERS - 1):
        h = jnp.dot(h.astype(jnp.bfloat16), w_rest[l].astype(jnp.bfloat16),
                    preferred_element_type=jnp.float32)
        h = jax.nn.sigmoid(h + b_rest[l])
    return h


def init_params(key, in_channel, out_channel):
    # Deterministic init, PyTorch-style uniform(-1/sqrt(fan_in), 1/sqrt(fan_in)).
    keys = jax.random.split(key, 2 * NUM_LAYERS)
    bound1 = 1.0 / jnp.sqrt(in_channel)
    w1 = jax.random.uniform(keys[0], (in_channel, out_channel),
                            jnp.float32, -bound1, bound1)
    b1 = jax.random.uniform(keys[1], (1, out_channel),
                            jnp.float32, -bound1, bound1)
    bound = 1.0 / jnp.sqrt(out_channel)
    w_rest = jnp.stack([
        jax.random.uniform(keys[2 + 2 * l], (out_channel, out_channel),
                           jnp.float32, -bound, bound)
        for l in range(NUM_LAYERS - 1)
    ])
    b_rest = jnp.stack([
        jax.random.uniform(keys[3 + 2 * l], (1, out_channel),
                           jnp.float32, -bound, bound)
        for l in range(NUM_LAYERS - 1)
    ])
    return w1, b1, w_rest, b_rest


if __name__ == "__main__":
    key = jax.random.PRNGKey(0)
    k_x, k_p = jax.random.split(key)

    in_channel = 32
    out_channel = 128
    w1, b1, w_rest, b_rest = init_params(k_p, in_channel, out_channel)

    # Main check: batch large enough for two 128-row tiles (even step count).
    batch = 256
    x = jax.random.normal(k_x, (batch, in_channel), jnp.float32)
    out = jax.block_until_ready(encoder_forward(x, w1, b1, w_rest, b_rest))
    assert out.shape == (batch, out_channel)
    assert out.dtype == jnp.bfloat16

    out_f32 = out.astype(jnp.float32)
    ref_bf16 = reference_forward_bf16(x, w1, b1, w_rest, b_rest)
    ref_f32 = reference_forward_f32(x, w1, b1, w_rest, b_rest)
    assert jnp.allclose(out_f32, ref_bf16, atol=2e-2, rtol=2e-2), \
        "mismatch vs bf16-mirrored reference"
    assert jnp.allclose(out_f32, ref_f32, atol=1e-1, rtol=1e-1), \
        "mismatch vs f32 reference"

    # Small / unaligned batch exercises the padding + tiny-tile path.
    x_small = jax.random.normal(jax.random.PRNGKey(1), (20, in_channel), jnp.float32)
    out_small = jax.block_until_ready(
        encoder_forward(x_small, w1, b1, w_rest, b_rest))
    ref_small = reference_forward_bf16(x_small, w1, b1, w_rest, b_rest)
    assert out_small.shape == (20, out_channel)
    assert jnp.allclose(out_small.astype(jnp.float32), ref_small,
                        atol=2e-2, rtol=2e-2), "mismatch (small batch)"

    # Single-tile path (batch < 16).
    x_tiny = jax.random.normal(jax.random.PRNGKey(2), (4, in_channel), jnp.float32)
    out_tiny = jax.block_until_ready(
        encoder_forward(x_tiny, w1, b1, w_rest, b_rest))
    ref_tiny = reference_forward_bf16(x_tiny, w1, b1, w_rest, b_rest)
    assert out_tiny.shape == (4, out_channel)
    assert jnp.allclose(out_tiny.astype(jnp.float32), ref_tiny,
                        atol=2e-2, rtol=2e-2), "mismatch (tiny batch)"

    print("KERNEL_OK")
</pallas_src>

<mosaic_0001>
module attributes {stable_mosaic.version = 11 : i64} {
  func.func @encoder_kernel(%arg0: i32, %arg1: memref<128x32xf32, #tpu.memory_space<vmem>>, %arg2: memref<32x128xbf16, #tpu.memory_space<vmem>>, %arg3: memref<4x128x128xbf16, #tpu.memory_space<vmem>>, %arg4: memref<8x128xf32, #tpu.memory_space<vmem>>, %arg5: memref<128x128xbf16, #tpu.memory_space<vmem>>) attributes {dimension_semantics = [#tpu.dimension_semantics<parallel>], iteration_bounds = array<i64: 2>, scalar_prefetch = 0 : i64, scratch_operands = 0 : i64, tpu.core_type = #tpu.core_type<tc>, window_params = [{transform_indices = @transform_0, window_bounds = array<i64: 128, 32>}, {pipeline_mode = #tpu.pipeline_mode<synchronous>, transform_indices = @transform_1, window_bounds = array<i64: 32, 128>}, {pipeline_mode = #tpu.pipeline_mode<synchronous>, transform_indices = @transform_2, window_bounds = array<i64: 4, 128, 128>}, {pipeline_mode = #tpu.pipeline_mode<synchronous>, transform_indices = @transform_3, window_bounds = array<i64: 8, 128>}, {transform_indices = @transform_4, window_bounds = array<i64: 128, 128>}]} {
    %c0 = arith.constant 0 : index
    %c0_0 = arith.constant 0 : index
    %0 = vector.load %arg1[%c0, %c0_0] : memref<128x32xf32, #tpu.memory_space<vmem>>, vector<128x32xf32>
    %1 = arith.truncf %0 : vector<128x32xf32> to vector<128x32xbf16>
    %c0_1 = arith.constant 0 : index
    %c0_2 = arith.constant 0 : index
    %2 = vector.load %arg2[%c0_1, %c0_2] : memref<32x128xbf16, #tpu.memory_space<vmem>>, vector<32x128xbf16>
    %cst = arith.constant dense<0.000000e+00> : vector<128x128xf32>
    %3 = tpu.matmul %1, %2, %cst {dimension_numbers = #tpu.dot_dimension_numbers<[1], [0], [0], [1], [0, 0, 1, 1], [], []>} : vector<128x32xbf16>, vector<32x128xbf16>, vector<128x128xf32> -> vector<128x128xf32>
    %c0_3 = arith.constant 0 : index
    %c0_4 = arith.constant 0 : index
    %4 = vector.load %arg4[%c0_3, %c0_4] : memref<8x128xf32, #tpu.memory_space<vmem>>, vector<1x128xf32>
    %5 = vector.broadcast %4 : vector<1x128xf32> to vector<128x128xf32>
    %6 = arith.addf %3, %5 : vector<128x128xf32>
    %cst_5 = arith.constant 0.000000e+00 : f32
    %7 = vector.broadcast %cst_5 : f32 to vector<128x128xf32>
    %8 = arith.subf %7, %6 : vector<128x128xf32>
    %9 = math.exp %8 : vector<128x128xf32>
    %cst_6 = arith.constant 1.000000e+00 : f32
    %10 = vector.broadcast %cst_6 : f32 to vector<128x128xf32>
    %11 = arith.addf %10, %9 : vector<128x128xf32>
    %12 = tpu.reciprocal %11 {approx = true} : vector<128x128xf32> -> vector<128x128xf32>
    %13 = arith.truncf %12 : vector<128x128xf32> to vector<128x128xbf16>
    %c0_7 = arith.constant 0 : index
    %c0_8 = arith.constant 0 : index
    %c0_9 = arith.constant 0 : index
    %14 = vector.load %arg3[%c0_7, %c0_8, %c0_9] : memref<4x128x128xbf16, #tpu.memory_space<vmem>>, vector<1x128x128xbf16>
    %15 = vector.shape_cast %14 : vector<1x128x128xbf16> to vector<128x128xbf16>
    %cst_10 = arith.constant dense<0.000000e+00> : vector<128x128xf32>
    %16 = tpu.matmul %13, %15, %cst_10 {dimension_numbers = #tpu.dot_dimension_numbers<[1], [0], [0], [1], [0, 0, 1, 1], [], []>} : vector<128x128xbf16>, vector<128x128xbf16>, vector<128x128xf32> -> vector<128x128xf32>
    %c1 = arith.constant 1 : index
    %c0_11 = arith.constant 0 : index
    %17 = vector.load %arg4[%c1, %c0_11] : memref<8x128xf32, #tpu.memory_space<vmem>>, vector<1x128xf32>
    %18 = vector.broadcast %17 : vector<1x128xf32> to vector<128x128xf32>
    %19 = arith.addf %16, %18 : vector<128x128xf32>
    %cst_12 = arith.constant 0.000000e+00 : f32
    %20 = vector.broadcast %cst_12 : f32 to vector<128x128xf32>
    %21 = arith.subf %20, %19 : vector<128x128xf32>
    %22 = math.exp %21 : vector<128x128xf32>
    %cst_13 = arith.constant 1.000000e+00 : f32
    %23 = vector.broadcast %cst_13 : f32 to vector<128x128xf32>
    %24 = arith.addf %23, %22 : vector<128x128xf32>
    %25 = tpu.reciprocal %24 {approx = true} : vector<128x128xf32> -> vector<128x128xf32>
    %26 = arith.truncf %25 : vector<128x128xf32> to vector<128x128xbf16>
    %c1_14 = arith.constant 1 : index
    %c0_15 = arith.constant 0 : index
    %c0_16 = arith.constant 0 : index
    %27 = vector.load %arg3[%c1_14, %c0_15, %c0_16] : memref<4x128x128xbf16, #tpu.memory_space<vmem>>, vector<1x128x128xbf16>
    %28 = vector.shape_cast %27 : vector<1x128x128xbf16> to vector<128x128xbf16>
    %cst_17 = arith.constant dense<0.000000e+00> : vector<128x128xf32>
    %29 = tpu.matmul %26, %28, %cst_17 {dimension_numbers = #tpu.dot_dimension_numbers<[1], [0], [0], [1], [0, 0, 1, 1], [], []>} : vector<128x128xbf16>, vector<128x128xbf16>, vector<128x128xf32> -> vector<128x128xf32>
    %c2 = arith.constant 2 : index
    %c0_18 = arith.constant 0 : index
    %30 = vector.load %arg4[%c2, %c0_18] : memref<8x128xf32, #tpu.memory_space<vmem>>, vector<1x128xf32>
    %31 = vector.broadcast %30 : vector<1x128xf32> to vector<128x128xf32>
    %32 = arith.addf %29, %31 : vector<128x128xf32>
    %cst_19 = arith.constant 0.000000e+00 : f32
    %33 = vector.broadcast %cst_19 : f32 to vector<128x128xf32>
    %34 = arith.subf %33, %32 : vector<128x128xf32>
    %35 = math.exp %34 : vector<128x128xf32>
    %cst_20 = arith.constant 1.000000e+00 : f32
    %36 = vector.broadcast %cst_20 : f32 to vector<128x128xf32>
    %37 = arith.addf %36, %35 : vector<128x128xf32>
    %38 = tpu.reciprocal %37 {approx = true} : vector<128x128xf32> -> vector<128x128xf32>
    %39 = arith.truncf %38 : vector<128x128xf32> to vector<128x128xbf16>
    %c2_21 = arith.constant 2 : index
    %c0_22 = arith.constant 0 : index
    %c0_23 = arith.constant 0 : index
    %40 = vector.load %arg3[%c2_21, %c0_22, %c0_23] : memref<4x128x128xbf16, #tpu.memory_space<vmem>>, vector<1x128x128xbf16>
    %41 = vector.shape_cast %40 : vector<1x128x128xbf16> to vector<128x128xbf16>
    %cst_24 = arith.constant dense<0.000000e+00> : vector<128x128xf32>
    %42 = tpu.matmul %39, %41, %cst_24 {dimension_numbers = #tpu.dot_dimension_numbers<[1], [0], [0], [1], [0, 0, 1, 1], [], []>} : vector<128x128xbf16>, vector<128x128xbf16>, vector<128x128xf32> -> vector<128x128xf32>
    %c3 = arith.constant 3 : index
    %c0_25 = arith.constant 0 : index
    %43 = vector.load %arg4[%c3, %c0_25] : memref<8x128xf32, #tpu.memory_space<vmem>>, vector<1x128xf32>
    %44 = vector.broadcast %43 : vector<1x128xf32> to vector<128x128xf32>
    %45 = arith.addf %42, %44 : vector<128x128xf32>
    %cst_26 = arith.constant 0.000000e+00 : f32
    %46 = vector.broadcast %cst_26 : f32 to vector<128x128xf32>
    %47 = arith.subf %46, %45 : vector<128x128xf32>
    %48 = math.exp %47 : vector<128x128xf32>
    %cst_27 = arith.constant 1.000000e+00 : f32
    %49 = vector.broadcast %cst_27 : f32 to vector<128x128xf32>
    %50 = arith.addf %49, %48 : vector<128x128xf32>
    %51 = tpu.reciprocal %50 {approx = true} : vector<128x128xf32> -> vector<128x128xf32>
    %52 = arith.truncf %51 : vector<128x128xf32> to vector<128x128xbf16>
    %c3_28 = arith.constant 3 : index
    %c0_29 = arith.constant 0 : index
    %c0_30 = arith.constant 0 : index
    %53 = vector.load %arg3[%c3_28, %c0_29, %c0_30] : memref<4x128x128xbf16, #tpu.memory_space<vmem>>, vector<1x128x128xbf16>
    %54 = vector.shape_cast %53 : vector<1x128x128xbf16> to vector<128x128xbf16>
    %cst_31 = arith.constant dense<0.000000e+00> : vector<128x128xf32>
    %55 = tpu.matmul %52, %54, %cst_31 {dimension_numbers = #tpu.dot_dimension_numbers<[1], [0], [0], [1], [0, 0, 1, 1], [], []>} : vector<128x128xbf16>, vector<128x128xbf16>, vector<128x128xf32> -> vector<128x128xf32>
    %c4 = arith.constant 4 : index
    %c0_32 = arith.constant 0 : index
    %56 = vector.load %arg4[%c4, %c0_32] : memref<8x128xf32, #tpu.memory_space<vmem>>, vector<1x128xf32>
    %57 = vector.broadcast %56 : vector<1x128xf32> to vector<128x128xf32>
    %58 = arith.addf %55, %57 : vector<128x128xf32>
    %cst_33 = arith.constant 0.000000e+00 : f32
    %59 = vector.broadcast %cst_33 : f32 to vector<128x128xf32>
    %60 = arith.subf %59, %58 : vector<128x128xf32>
    %61 = math.exp %60 : vector<128x128xf32>
    %cst_34 = arith.constant 1.000000e+00 : f32
    %62 = vector.broadcast %cst_34 : f32 to vector<128x128xf32>
    %63 = arith.addf %62, %61 : vector<128x128xf32>
    %64 = tpu.reciprocal %63 {approx = true} : vector<128x128xf32> -> vector<128x128xf32>
    %65 = arith.truncf %64 : vector<128x128xf32> to vector<128x128xbf16>
    %c0_35 = arith.constant 0 : index
    %c0_36 = arith.constant 0 : index
    %66 = vector.load %arg5[%c0_35, %c0_36] : memref<128x128xbf16, #tpu.memory_space<vmem>>, vector<128x128xbf16>
    tpu.vector_store %arg5[%c0_35, %c0_36], %65 {strides = array<i32>} : memref<128x128xbf16, #tpu.memory_space<vmem>>, vector<128x128xbf16>,
    return
  }
  func.func @transform_0(%arg0: i32) -> (i32, i32) {
    %c0_i32 = arith.constant 0 : i32
    %c0_i32_0 = arith.constant 0 : i32
    return %arg0, %c0_i32 : i32, i32
  }
  func.func @transform_1(%arg0: i32) -> (i32, i32) {
    %c0_i32 = arith.constant 0 : i32
    %c0_i32_0 = arith.constant 0 : i32
    %c0_i32_1 = arith.constant 0 : i32
    return %c0_i32, %c0_i32_0 : i32, i32
  }
  func.func @transform_2(%arg0: i32) -> (i32, i32, i32) {
    %c0_i32 = arith.constant 0 : i32
    %c0_i32_0 = arith.constant 0 : i32
    %c0_i32_1 = arith.constant 0 : i32
    %c0_i32_2 = arith.constant 0 : i32
    return %c0_i32, %c0_i32_0, %c0_i32_1 : i32, i32, i32
  }
  func.func @transform_3(%arg0: i32) -> (i32, i32) {
    %c0_i32 = arith.constant 0 : i32
    %c0_i32_0 = arith.constant 0 : i32
    %c0_i32_1 = arith.constant 0 : i32
    return %c0_i32, %c0_i32_0 : i32, i32
  }
  func.func @transform_4(%arg0: i32) -> (i32, i32) {
    %c0_i32 = arith.constant 0 : i32
    %c0_i32_0 = arith.constant 0 : i32
    return %arg0, %c0_i32 : i32, i32
  }
}

</mosaic_0001>

<bundles_post_ra>
// kernel: tpu_custom_call.1
= control target key start
LH: loop header
LB: loop body
LE: loop exit
PB: predicated region body
PF: predicated region fallthrough
CT: control target
= control target key end

     0   :  { %9 = vsyncpa [#allocation3], 0  ;;  %s2847_s0 = inlined_call_operand.vmem [shape: f32[256,32], index: 0, kind: input, shape index: {}]   ;;  %s2848_s1 = inlined_call_operand.vmem [shape: bf16[32,128], index: 1, kind: input, shape index: {}]   ;;  %s2849_s2 = inlined_call_operand.vmem [shape: bf16[4,128,128], index: 2, kind: input, shape index: {}]   ;;  %s2850_s3 = inlined_call_operand.vmem [shape: f32[8,128], index: 3, kind: input, shape index: {}]   ;;  %s2851_s4 = inlined_call_operand.hbm [shape: bf16[256,128], index: 4, kind: output, shape index: {}]  }
   0x1   :  { %11 = vsyncpa [#allocation3 + $0x1], 0  ;;  %s2516_s15 = smov 0   ;;  %s2518_s16 = smov 0  }
   0x2   :  { %s2520_s17 = smov 0   ;;  %s2522_s18 = smov 0  }
   0x3 LB: > { %s2537_s19 = sadd.s32 4294967295, %s2486_s18   ;;  %s1622_s20 = sadd.s32 4294967294, %s2486_s18   ;;  %s2486_s18 = sphi %s2522_s18, %s2857_s18   ;;  %s2482_s17 = sphi %s2520_s17, %s2856_s17   ;;  %s2478_s16 = sphi %s2518_s16, %s2855_s16   ;;  %s2474_s15 = sphi %s2516_s15, %s2854_s15  }
   0x4   : > { %s2541_s21 = sadd.s32 1, %s2486_s18   ;;  %s113_s22 = sadd.s32 1, %s2482_s17 }
   0x5   : > { %s110_s23 = ssub.s32 %s2486_s18, %s2541_s21  ;;  %p123_p0 = scmp.ne.s32.totalorder %s2482_s17, %s2478_s16 }
   0x6   : > { %p111_p1 = scmp.eq.s32.totalorder %s110_s23, 0  ;;  %p124_p2 = scmp.eq.s32.totalorder %s2537_s19, 1 }
   0x7   : > { %p129_p3 = scmp.ne.s32.totalorder %s2478_s16, %s2474_s15  ;;  %p130_p4 = scmp.eq.s32.totalorder %s1622_s20, 1 }
   0x8   : > { %s2552_s24 = scalar_select %p111_p1, %s2482_s17, %s113_s22  }
   0x9   : > { %p2554_p5 = por %p124_p2, %p123_p0  ;;  %p2558_p6 = por %p130_p4, %p129_p3 }
   0xa   : > { %p1625_p7 = scmp.ge.s32.totalorder %s2486_s18, 1  ;;  %p166_p8 = scmp.lt.s32.totalorder %s2486_s18, 3 }
   0xc   : > { %p167_p9 = pnand %p1625_p7, %p166_p8 }
   0xd   : > { %s1627_s29 = sshll.u32 (!%p167_p9), %s2537_s19, 4  ;;  %s189_s22 = sand.u32 (!%p167_p9), 1, %s2478_s16  }
   0xe   : > { %170 = sbr.rel (%p167_p9) target bundleno = 1256 (0x4e8), region = 36  ;;  %p193_p10 = scmp.lt.s32.totalorder (!%p167_p9), %s1627_s29, 31 }
   0xf   : > { %s1626_s23 = sshll.u32 (!%p167_p9), %s189_s22, 6  ;;  %s1761_s28 = sshll.u32 (!%p167_p9), %s2537_s19, 10 }
  0x10   : > { %s2786_s27 = scalar_lea.vmem (!%p167_p9), [#allocation2], %s1626_s23  ;;  %s2807_s19 = scalar_lea.sflag (!%p167_p9), [#allocation3], %s189_s22 }
  0x11   : > { %s2488_s8 = smov (!%p167_p9), [#allocation2]  }
  0x13   : > { %v2072_v0 = vld [vmem:[%s2848_s1 + $0x8] sm:$0xff]   ;;  %v2073_v1 = vld [vmem:[%s2848_s1] sm:$0xff]   ;;  %s2859_s29 = smov (!%p193_p10, %s1627_s29), 31  ;;  %vm245_vm0 = vcmask 261120   ;;  %v2074_v26 = vld [vmem:[%s2849_s2 + $0x38] sm:$0xff]  }
  0x14   : > { %1883 = vmatprep.subr.bf16.mxu0 %v2072_v0  ;;  %s1628_s6 = sshll.u32 %s2859_s29, 3  ;;  %1903 = vmatprep.subr.bf16.mxu1 %v2074_v26  ;;  %v2075_v27 = vld [vmem:[%s2849_s2 + $0x30] sm:$0xff]   ;;  %v2076_v28 = vld [vmem:[%s2849_s2 + $0x28] sm:$0xff]   ;;  %v2077_v29 = vld [vmem:[%s2849_s2 + $0x20] sm:$0xff]   ;;  %s1560_s29 = sshll.u32 %s2786_s27, 4  ;;  %s2801_s29 = int_to_ptr.vmem [resolvable:$true] %s1560_s29 }
  0x15   : > { %1884 = vmatpush3.bf16.msra.mxu0 %v2072_v0  ;;  %s196_s9 = scalar_lea.vmem %s2847_s0, %s1628_s6  ;;  %1904 = vmatpush3.bf16.msra.mxu1 %v2074_v26  ;;  %v2078_v30 = vld [vmem:[%s2849_s2 + $0x18] sm:$0xff]   ;;  %v2079_v31 = vld [vmem:[%s2849_s2 + $0x10] sm:$0xff]   ;;  %v2080_v32 = vld [vmem:[%s2849_s2 + $0x8] sm:$0xff]   ;;  %s2799_s6 = scalar_lea.hbm %s2851_s4, %s1761_s28 }
  0x16   : > { %1885 = vmatprep.subr.bf16.mxu0 %v2073_v1  ;;  %v200_v2 = vld [vmem:[%s196_s9] sm:$0xff]  ;;  %v201_v3 = vld [vmem:[%s196_s9 + $0x8] sm:$0xff]  ;;  %v202_v4 = vld [vmem:[%s196_s9 + $0x10] sm:$0xff]  ;;  %1905 = vmatprep.subr.bf16.mxu1 %v2075_v27  ;;  %s2426_s7 = scalar_lea.vmem %s2801_s29, 1024 }
  0x17   : > { %v216_v5 = vpack.c.bf16 %v201_v3, %v200_v2  ;;  %v203_v6 = vld [vmem:[%s196_s9 + $0x18] sm:$0xff]  ;;  %v204_v7 = vld [vmem:[%s196_s9 + $0x20] sm:$0xff]  ;;  %v205_v8 = vld [vmem:[%s196_s9 + $0x28] sm:$0xff]  ;;  %p2427_p11 = scmp.ne.s32.totalorder %s2801_s29, %s2426_s7 }
  0x18   : > { %v217_v9 = vpack.c.bf16 %v203_v6, %v202_v4  ;;  %v218_v10 = vpack.c.bf16 %v205_v8, %v204_v7  ;;  %v206_v11 = vld [vmem:[%s196_s9 + $0x30] sm:$0xff]  ;;  %v207_v12 = vld [vmem:[%s196_s9 + $0x38] sm:$0xff]  ;;  %v208_v13 = vld [vmem:[%s196_s9 + $0x40] sm:$0xff] }
  0x19   : > { %1886 = vmatpush3.bf16.msra.mxu0 %v2073_v1  ;;  %1887 = vmatprep.mubr.msk.bf16.mxu0 %vm245_vm0, %v216_v5  ;;  %v209_v14 = vld [vmem:[%s196_s9 + $0x48] sm:$0xff]  ;;  %v219_v15 = vpack.c.bf16 %v207_v12, %v206_v11  ;;  %v210_v17 = vld [vmem:[%s196_s9 + $0x50] sm:$0xff]  ;;  %v211_v18 = vld [vmem:[%s196_s9 + $0x58] sm:$0xff]  ;;  %p2428_p12 = pnand %p2427_p11, %p2554_p5 }
  0x1a   : > { %v220_v16 = vpack.c.bf16 %v209_v14, %v208_v13  ;;  %v212_v19 = vld [vmem:[%s196_s9 + $0x60] sm:$0xff]  ;;  %v213_v20 = vld [vmem:[%s196_s9 + $0x68] sm:$0xff]  ;;  %v221_v21 = vpack.c.bf16 %v211_v18, %v210_v17  ;;  %v214_v23 = vld [vmem:[%s196_s9 + $0x70] sm:$0xff]  ;;  %1906 = vmatpush3.bf16.msra.mxu1 %v2075_v27 }
  0x1b   : > { %v222_v22 = vpack.c.bf16 %v213_v20, %v212_v19  ;;  %v215_v24 = vld [vmem:[%s196_s9 + $0x78] sm:$0xff]  ;;  %1907 = vmatprep.subr.bf16.mxu1 %v2076_v28  ;;  %v2081_v33 = vld [vmem:[%s2849_s2] sm:$0xff]   ;;  %p2429_p13 = pneg %p2428_p12  ;;  %s2430_s9 = sshll.u32 %s2488_s8, 4  ;;  %s2431_s9 = int_to_ptr.vmem [resolvable:$false] %s2430_s9 }
  0x1c   : > { %1888 = vmatmul.mubr.msk.bf16.vlgmr.msra.gmra.mxu0 %vm245_vm0, %v217_v9  ;;  %v223_v25 = vpack.c.bf16 %v215_v24, %v214_v23  ;;  %v2609_v34 = vld [vmem:[%s2850_s3] ss:$0 sm:$0xff]  ;;  %s2432_s10 = scalar_lea.vmem %s2431_s9, 2048  ;;  %p2433_p0 = scmp.lt.s32.totalorder %s2801_s29, %s2431_s9 }
  0x1d   : > { %1891 = vmatprep.mubr.msk.bf16.mxu0 %vm245_vm0, %v218_v10  ;;  %p2434_p1 = scmp.lt.s32.totalorder %s2432_s10, %s2426_s7 }
  0x1e   : > { %1908 = vmatpush3.bf16.msra.mxu1 %v2076_v28 }
  0x1f   : > { %1909 = vmatprep.subr.bf16.mxu1 %v2077_v29  ;;  %p2435_p2 = por %p2434_p1, %p2433_p0 }
  0x21   : > { %p2436_p3 = pnand %p2435_p2, %p2429_p13 }
  0x22   : > { %1910 = vmatpush3.bf16.msra.mxu1 %v2077_v29 }
  0x23   : > { %1911 = vmatprep.subr.bf16.mxu1 %v2078_v30 }
  0x24   : > { %1892 = vmatmul.mubr.msk.bf16.gmra.mxu0 %vm245_vm0, %v219_v15 }
  0x25   : > { %1895 = vmatprep.mubr.msk.bf16.mxu0 %vm245_vm0, %v220_v16 }
  0x26   : > { %1912 = vmatpush3.bf16.msra.mxu1 %v2078_v30 }
  0x27   : > { %1913 = vmatprep.subr.bf16.mxu1 %v2079_v31 }
  0x2a   : > { %1914 = vmatpush3.bf16.msra.mxu1 %v2079_v31 }
  0x2b   : > { %1915 = vmatprep.subr.bf16.mxu1 %v2080_v32 }
  0x2c   : > { %1896 = vmatmul.mubr.msk.bf16.gmra.mxu0 %vm245_vm0, %v221_v21 }
  0x2d   : > { %1899 = vmatprep.mubr.msk.bf16.mxu0 %vm245_vm0, %v222_v22 }
  0x2e   : > { %1916 = vmatpush3.bf16.msra.mxu1 %v2080_v32 }
  0x2f   : > { %1917 = vmatprep.subr.bf16.mxu1 %v2081_v33 }
  0x32   : > { %1918 = vmatpush3.bf16.msra.mxu1 %v2081_v33 }
  0x34   : > { %1900 = vmatmul.mubr.msk.bf16.gmra.mxu0 %vm245_vm0, %v223_v25 }
  0xdc   : > { %v1889_v35 = vpop.f32.mrf.mxu0 }
  0xdd   : > { %v313_v36 = vadd.f32 %v1889_v35, %v2609_v34 }
  0xde   : > { %v304_v37 = vpop.f32.mrf.mxu0 }
  0xdf   : > { %v369_v38 = vsub.f32 0.0, %v313_v36  ;;  %v305_v39 = vadd.f32 %v2609_v34, %v304_v37 }
  0xe0   : > { %v1890_v40 = vpop.f32.mrf.mxu0 }
  0xe1   : > { %v387_v41 = vmul.f32 1.442695, %v369_v38  ;;  %v367_v42 = vsub.f32 0.0, %v305_v39  ;;  %v316_v43 = vadd.f32 %v1890_v40, %v2609_v34 }
  0xe2   : > { %v307_v44 = vpop.f32.mrf.mxu0 }
  0xe3   : > { %2106 = vpow2.f32 %v387_v41  ;;  %v383_v45 = vmul.f32 1.442695, %v367_v42  ;;  %v370_v46 = vsub.f32 0.0, %v316_v43  ;;  %v308_v47 = vadd.f32 %v2609_v34, %v307_v44 }
  0xe4   : > { %v1893_v48 = vpop.f32.mrf.mxu0 }
  0xe5   : > { %2108 = vpow2.f32 %v383_v45  ;;  %v389_v49 = vmul.f32 1.442695, %v370_v46  ;;  %v368_v50 = vsub.f32 0.0, %v308_v47  ;;  %v329_v51 = vadd.f32 %v1893_v48, %v2609_v34 }
  0xe6   : > { %v320_v52 = vpop.f32.mrf.mxu0 }
  0xe7   : > { %2110 = vpow2.f32 %v389_v49  ;;  %v385_v53 = vmul.f32 1.442695, %v368_v50  ;;  %v373_v54 = vsub.f32 0.0, %v329_v51  ;;  %v321_v55 = vadd.f32 %v2609_v34, %v320_v52 }
  0xe8   : > { %v1894_v56 = vpop.f32.mrf.mxu0 }
  0xe9   : > { %2112 = vpow2.f32 %v385_v53  ;;  %v395_v57 = vmul.f32 1.442695, %v373_v54  ;;  %v371_v58 = vsub.f32 0.0, %v321_v55  ;;  %v332_v59 = vadd.f32 %v1894_v56, %v2609_v34 }
  0xea   : > { %v323_v60 = vpop.f32.mrf.mxu0 }
  0xeb   : > { %2114 = vpow2.f32 %v395_v57  ;;  %v391_v61 = vmul.f32 1.442695, %v371_v58  ;;  %v374_v62 = vsub.f32 0.0, %v332_v59  ;;  %v324_v63 = vadd.f32 %v2609_v34, %v323_v60 }
  0xec   : > { %v1897_v0 = vpop.f32.mrf.mxu0 }
  0xed   : > { %2116 = vpow2.f32 %v391_v61  ;;  %v397_v1 = vmul.f32 1.442695, %v374_v62  ;;  %v372_v2 = vsub.f32 0.0, %v324_v63  ;;  %v345_v3 = vadd.f32 %v1897_v0, %v2609_v34 }
  0xee   : > { %v336_v4 = vpop.f32.mrf.mxu0 }
  0xef   : > { %2118 = vpow2.f32 %v397_v1  ;;  %v393_v5 = vmul.f32 1.442695, %v372_v2  ;;  %v377_v6 = vsub.f32 0.0, %v345_v3  ;;  %v337_v7 = vadd.f32 %v2609_v34, %v336_v4 }
  0xf0   : > { %v2107_v8 = vpop.eup %2106  ;;  %v1898_v9 = vpop.f32.mrf.mxu0 }
  0xf1   : > { %v417_v10 = vadd.f32 1.0, %v2107_v8  ;;  %2120 = vpow2.f32 %v393_v5  ;;  %v403_v11 = vmul.f32 1.442695, %v377_v6  ;;  %v375_v12 = vsub.f32 0.0, %v337_v7 }
  0xf2   : > { %v2109_v13 = vpop.eup %2108  ;;  %v348_v14 = vadd.f32 %v1898_v9, %v2609_v34  ;;  %v339_v15 = vpop.f32.mrf.mxu0 }
  0xf3   : > { %2122 = vrcp.f32 %v417_v10  ;;  %v415_v16 = vadd.f32 1.0, %v2109_v13  ;;  %v399_v17 = vmul.f32 1.442695, %v375_v12  ;;  %v340_v18 = vadd.f32 %v2609_v34, %v339_v15 }
  0xf4   : > { %v2111_v19 = vpop.eup %2110  ;;  %2124 = vpow2.f32 %v403_v11  ;;  %v378_v20 = vsub.f32 0.0, %v348_v14  ;;  %v1901_v21 = vpop.f32.mrf.mxu0 }
  0xf5   : > { %2126 = vrcp.f32 %v415_v16  ;;  %v418_v22 = vadd.f32 1.0, %v2111_v19  ;;  %v376_v23 = vsub.f32 0.0, %v340_v18  ;;  %v361_v24 = vadd.f32 %v1901_v21, %v2609_v34 }
  0xf6   : > { %v2113_v25 = vpop.eup %2112  ;;  %2128 = vpow2.f32 %v399_v17  ;;  %v405_v26 = vmul.f32 1.442695, %v378_v20  ;;  %v352_v27 = vpop.f32.mrf.mxu0 }
  0xf7   : > { %2130 = vrcp.f32 %v418_v22  ;;  %v416_v28 = vadd.f32 1.0, %v2113_v25  ;;  %v401_v29 = vmul.f32 1.442695, %v376_v23  ;;  %v381_v30 = vsub.f32 0.0, %v361_v24 }
  0xf8   : > { %v2115_v31 = vpop.eup %2114  ;;  %2132 = vpow2.f32 %v405_v26  ;;  %v353_v32 = vadd.f32 %v2609_v34, %v352_v27  ;;  %v1902_v33 = vpop.f32.mrf.mxu0  ;;  %v2082_v27 = vld [vmem:[%s2849_s2 + $0x78] sm:$0xff]  }
  0xf9   : > { %2134 = vrcp.f32 %v416_v28  ;;  %v421_v35 = vadd.f32 1.0, %v2115_v31  ;;  %v411_v36 = vmul.f32 1.442695, %v381_v30  ;;  %v364_v37 = vadd.f32 %v1902_v33, %v2609_v34  ;;  %1935 = vmatprep.subr.bf16.mxu0 %v2082_v27  ;;  %v2083_v28 = vld [vmem:[%s2849_s2 + $0x70] sm:$0xff]   ;;  %v2085_v30 = vld [vmem:[%s2849_s2 + $0x60] sm:$0xff]   ;;  %v2086_v31 = vld [vmem:[%s2849_s2 + $0x58] sm:$0xff]  }
  0xfa   : > { %v2117_v38 = vpop.eup %2116  ;;  %2136 = vpow2.f32 %v401_v29  ;;  %v379_v39 = vsub.f32 0.0, %v353_v32  ;;  %v355_v40 = vpop.f32.mrf.mxu0  ;;  %1936 = vmatpush3.bf16.msra.mxu0 %v2082_v27  ;;  %v2084_v29 = vld [vmem:[%s2849_s2 + $0x68] sm:$0xff]   ;;  %v2087_v32 = vld [vmem:[%s2849_s2 + $0x50] sm:$0xff]  }
  0xfb   : > { %2138 = vrcp.f32 %v421_v35  ;;  %v419_v41 = vadd.f32 1.0, %v2117_v38  ;;  %v382_v42 = vsub.f32 0.0, %v364_v37  ;;  %v356_v43 = vadd.f32 %v2609_v34, %v355_v40  ;;  %1937 = vmatprep.subr.bf16.mxu0 %v2083_v28  ;;  %v2088_v33 = vld [vmem:[%s2849_s2 + $0x48] sm:$0xff]   ;;  %v2089_v35 = vld [vmem:[%s2849_s2 + $0x40] sm:$0xff]  }
  0xfc   : > { %v2119_v44 = vpop.eup %2118  ;;  %2140 = vpow2.f32 %v411_v36  ;;  %v407_v45 = vmul.f32 1.442695, %v379_v39  ;;  %v2654_v36 = vld [vmem:[%s2850_s3 + $0x1] ss:$0 sm:$0xff] }
  0xfd   : > { %2142 = vrcp.f32 %v419_v41  ;;  %v422_v46 = vadd.f32 1.0, %v2119_v44  ;;  %v413_v47 = vmul.f32 1.442695, %v382_v42  ;;  %v380_v48 = vsub.f32 0.0, %v356_v43 }
  0xfe   : > { %v2121_v49 = vpop.eup %2120  ;;  %2144 = vpow2.f32 %v407_v45  ;;  %1938 = vmatpush3.bf16.msra.mxu0 %v2083_v28 }
  0xff   : > { %2146 = vrcp.f32 %v422_v46  ;;  %v420_v50 = vadd.f32 1.0, %v2121_v49  ;;  %v409_v51 = vmul.f32 1.442695, %v380_v48  ;;  %1939 = vmatprep.subr.bf16.mxu0 %v2084_v29 }
 0x100   : > { %v2123_v52 = vpop.eup %2122  ;;  %2148 = vpow2.f32 %v413_v47 }
 0x101   : > { %v2125_v53 = vpop.eup %2124  ;;  %2150 = vrcp.f32 %v420_v50 }
 0x102   : > { %v2127_v54 = vpop.eup %2126  ;;  %2152 = vpow2.f32 %v409_v51  ;;  %v425_v61 = vadd.f32 1.0, %v2125_v53  ;;  %1940 = vmatpush3.bf16.msra.mxu0 %v2084_v29 }
 0x103   : > { %v2129_v55 = vpop.eup %2128  ;;  %1941 = vmatprep.subr.bf16.mxu0 %v2085_v30 }
 0x104   : > { %v2131_v34 = vpop.eup %2130  ;;  %v423_v56 = vadd.f32 1.0, %v2129_v55 }
 0x105   : > { %v2133_v57 = vpop.eup %2132  ;;  %v448_v1 = vpack.c.bf16 %v2131_v34, %v2123_v52 }
 0x106   : > { %v2135_v58 = vpop.eup %2134  ;;  %v426_v59 = vadd.f32 1.0, %v2133_v57  ;;  %2154 = vrcp.f32 %v423_v56  ;;  %1942 = vmatpush3.bf16.msra.mxu0 %v2085_v30 }
 0x107   : > { %v2137_v60 = vpop.eup %2136  ;;  %v447_v62 = vpack.c.bf16 %v2135_v58, %v2127_v54  ;;  %1943 = vmatprep.subr.bf16.mxu0 %v2086_v31 }
 0x108   : > { %v2139_v63 = vpop.eup %2138  ;;  %v424_v0 = vadd.f32 1.0, %v2137_v60  ;;  %2156 = vrcp.f32 %v426_v59 }
 0x109   : > { %v2141_v2 = vpop.eup %2140  ;;  %1919 = vmatprep.mubr.bf16.mxu1 %v447_v62 }
 0x10a   : > { %v2143_v3 = vpop.eup %2142  ;;  %2158 = vrcp.f32 %v424_v0  ;;  %1920 = vmatmul.mubr.bf16.vlgmr.msra.gmra.mxu1 %v448_v1  ;;  %v429_v11 = vadd.f32 1.0, %v2141_v2  ;;  %1944 = vmatpush3.bf16.msra.mxu0 %v2086_v31 }
 0x10b   : > { %v2145_v4 = vpop.eup %2144  ;;  %2160 = vrcp.f32 %v425_v61  ;;  %1945 = vmatprep.subr.bf16.mxu0 %v2087_v32 }
 0x10c   : > { %v2147_v5 = vpop.eup %2146  ;;  %v427_v6 = vadd.f32 1.0, %v2145_v4 }
 0x10d   : > { %v2149_v7 = vpop.eup %2148  ;;  %v450_v14 = vpack.c.bf16 %v2147_v5, %v2139_v63 }
 0x10e   : > { %v2151_v8 = vpop.eup %2150  ;;  %v430_v9 = vadd.f32 1.0, %v2149_v7  ;;  %2162 = vrcp.f32 %v427_v6  ;;  %1946 = vmatpush3.bf16.msra.mxu0 %v2087_v32 }
 0x10f   : > { %v2153_v10 = vpop.eup %2152  ;;  %v449_v12 = vpack.c.bf16 %v2151_v8, %v2143_v3  ;;  %1947 = vmatprep.subr.bf16.mxu0 %v2088_v33 }
 0x110   : > { %v428_v13 = vadd.f32 1.0, %v2153_v10  ;;  %2164 = vrcp.f32 %v430_v9 }
 0x111   : > { %1923 = vmatprep.mubr.bf16.mxu1 %v449_v12 }
 0x112   : > { %2166 = vrcp.f32 %v428_v13  ;;  %1924 = vmatmul.mubr.bf16.gmra.mxu1 %v450_v14  ;;  %1948 = vmatpush3.bf16.msra.mxu0 %v2088_v33 }
 0x113   : > { %2168 = vrcp.f32 %v429_v11  ;;  %v2155_v15 = vpop.eup %2154  ;;  %1949 = vmatprep.subr.bf16.mxu0 %v2089_v35 }
 0x115   : > { %v2157_v16 = vpop.eup %2156 }
 0x116   : > { %1950 = vmatpush3.bf16.msra.mxu0 %v2089_v35 }
 0x117   : > { %v2159_v17 = vpop.eup %2158 }
 0x118   : > { %v2161_v18 = vpop.eup %2160  ;;  %v451_v19 = vpack.c.bf16 %v2159_v17, %v2155_v15 }
 0x119   : > { %v452_v20 = vpack.c.bf16 %v2157_v16, %v2161_v18 }
 0x11a   : > { %1927 = vmatprep.mubr.bf16.mxu1 %v451_v19 }
 0x11b   : > { %1928 = vmatmul.mubr.bf16.gmra.mxu1 %v452_v20  ;;  %v2163_v21 = vpop.eup %2162 }
 0x11d   : > { %v2165_v22 = vpop.eup %2164 }
 0x11f   : > { %v2167_v23 = vpop.eup %2166 }
 0x120   : > { %v2169_v24 = vpop.eup %2168  ;;  %v453_v25 = vpack.c.bf16 %v2167_v23, %v2163_v21 }
 0x121   : > { %v454_v26 = vpack.c.bf16 %v2165_v22, %v2169_v24 }
 0x122   : > { %1931 = vmatprep.mubr.bf16.mxu1 %v453_v25 }
 0x123   : > { %1932 = vmatmul.mubr.bf16.gmra.mxu1 %v454_v26 }
 0x1ca   : > { %v1921_v37 = vpop.f32.mrf.mxu1 }
 0x1cb   : > { %v567_v38 = vadd.f32 %v1921_v37, %v2654_v36 }
 0x1cc   : > { %v558_v39 = vpop.f32.mrf.mxu1 }
 0x1cd   : > { %v623_v40 = vsub.f32 0.0, %v567_v38  ;;  %v559_v41 = vadd.f32 %v2654_v36, %v558_v39 }
 0x1ce   : > { %v1922_v42 = vpop.f32.mrf.mxu1 }
 0x1cf   : > { %v641_v43 = vmul.f32 1.442695, %v623_v40  ;;  %v621_v44 = vsub.f32 0.0, %v559_v41  ;;  %v570_v45 = vadd.f32 %v1922_v42, %v2654_v36 }
 0x1d0   : > { %v561_v46 = vpop.f32.mrf.mxu1 }
 0x1d1   : > { %2170 = vpow2.f32 %v641_v43  ;;  %v637_v47 = vmul.f32 1.442695, %v621_v44  ;;  %v624_v48 = vsub.f32 0.0, %v570_v45  ;;  %v562_v49 = vadd.f32 %v2654_v36, %v561_v46 }
 0x1d2   : > { %v1925_v50 = vpop.f32.mrf.mxu1 }
 0x1d3   : > { %2172 = vpow2.f32 %v637_v47  ;;  %v643_v51 = vmul.f32 1.442695, %v624_v48  ;;  %v622_v52 = vsub.f32 0.0, %v562_v49  ;;  %v583_v53 = vadd.f32 %v1925_v50, %v2654_v36 }
 0x1d4   : > { %v574_v54 = vpop.f32.mrf.mxu1 }
 0x1d5   : > { %2174 = vpow2.f32 %v643_v51  ;;  %v639_v55 = vmul.f32 1.442695, %v622_v52  ;;  %v627_v34 = vsub.f32 0.0, %v583_v53  ;;  %v575_v56 = vadd.f32 %v2654_v36, %v574_v54 }
 0x1d6   : > { %v1926_v57 = vpop.f32.mrf.mxu1 }
 0x1d7   : > { %2176 = vpow2.f32 %v639_v55  ;;  %v649_v58 = vmul.f32 1.442695, %v627_v34  ;;  %v625_v59 = vsub.f32 0.0, %v575_v56  ;;  %v586_v60 = vadd.f32 %v1926_v57, %v2654_v36 }
 0x1d8   : > { %v577_v61 = vpop.f32.mrf.mxu1 }
 0x1d9   : > { %2178 = vpow2.f32 %v649_v58  ;;  %v645_v62 = vmul.f32 1.442695, %v625_v59  ;;  %v628_v63 = vsub.f32 0.0, %v586_v60  ;;  %v578_v0 = vadd.f32 %v2654_v36, %v577_v61 }
 0x1db   : > { %2180 = vpow2.f32 %v645_v62  ;;  %v651_v1 = vmul.f32 1.442695, %v628_v63  ;;  %v626_v2 = vsub.f32 0.0, %v578_v0  ;;  %v1929_v3 = vpop.f32.mrf.mxu1 }
 0x1dc   : > { %v599_v4 = vadd.f32 %v1929_v3, %v2654_v36 }
 0x1dd   : > { %2182 = vpow2.f32 %v651_v1  ;;  %v647_v5 = vmul.f32 1.442695, %v626_v2  ;;  %v590_v6 = vpop.f32.mrf.mxu1 }
 0x1de   : > { %v2171_v7 = vpop.eup %2170  ;;  %v631_v8 = vsub.f32 0.0, %v599_v4  ;;  %v591_v9 = vadd.f32 %v2654_v36, %v590_v6 }
 0x1df   : > { %v671_v10 = vadd.f32 1.0, %v2171_v7  ;;  %2184 = vpow2.f32 %v647_v5  ;;  %v1930_v11 = vpop.f32.mrf.mxu1 }
 0x1e0   : > { %v2173_v12 = vpop.eup %2172  ;;  %v657_v13 = vmul.f32 1.442695, %v631_v8  ;;  %v629_v14 = vsub.f32 0.0, %v591_v9  ;;  %v602_v15 = vadd.f32 %v1930_v11, %v2654_v36 }
 0x1e1   : > { %2186 = vrcp.f32 %v671_v10  ;;  %v669_v16 = vadd.f32 1.0, %v2173_v12  ;;  %v593_v17 = vpop.f32.mrf.mxu1 }
 0x1e2   : > { %v2175_v18 = vpop.eup %2174  ;;  %2188 = vpow2.f32 %v657_v13  ;;  %v653_v19 = vmul.f32 1.442695, %v629_v14  ;;  %v632_v20 = vsub.f32 0.0, %v602_v15  ;;  %v594_v21 = vadd.f32 %v2654_v36, %v593_v17 }
 0x1e3   : > { %2190 = vrcp.f32 %v669_v16  ;;  %v672_v22 = vadd.f32 1.0, %v2175_v18  ;;  %v1933_v23 = vpop.f32.mrf.mxu1 }
 0x1e4   : > { %v2177_v24 = vpop.eup %2176  ;;  %2192 = vpow2.f32 %v653_v19  ;;  %v659_v25 = vmul.f32 1.442695, %v632_v20  ;;  %v630_v26 = vsub.f32 0.0, %v594_v21  ;;  %v615_v27 = vadd.f32 %v1933_v23, %v2654_v36 }
 0x1e5   : > { %2194 = vrcp.f32 %v672_v22  ;;  %v670_v28 = vadd.f32 1.0, %v2177_v24  ;;  %v606_v29 = vpop.f32.mrf.mxu1 }
 0x1e6   : > { %v2179_v30 = vpop.eup %2178  ;;  %2196 = vpow2.f32 %v659_v25  ;;  %v655_v31 = vmul.f32 1.442695, %v630_v26  ;;  %v635_v32 = vsub.f32 0.0, %v615_v27  ;;  %v607_v33 = vadd.f32 %v2654_v36, %v606_v29  ;;  %v2091_v29 = vld [vmem:[%s2849_s2 + $0xb0] sm:$0xff]  }
 0x1e7   : > { %2198 = vrcp.f32 %v670_v28  ;;  %v675_v35 = vadd.f32 1.0, %v2179_v30  ;;  %v1934_v37 = vpop.f32.mrf.mxu1  ;;  %v2090_v28 = vld [vmem:[%s2849_s2 + $0xb8] sm:$0xff]   ;;  %v2092_v30 = vld [vmem:[%s2849_s2 + $0xa8] sm:$0xff]  }
 0x1e8   : > { %v2181_v38 = vpop.eup %2180  ;;  %2200 = vpow2.f32 %v655_v31  ;;  %v665_v39 = vmul.f32 1.442695, %v635_v32  ;;  %v633_v40 = vsub.f32 0.0, %v607_v33  ;;  %v618_v41 = vadd.f32 %v1934_v37, %v2654_v36  ;;  %1967 = vmatprep.subr.bf16.mxu1 %v2090_v28  ;;  %v2093_v31 = vld [vmem:[%s2849_s2 + $0xa0] sm:$0xff]   ;;  %v2094_v32 = vld [vmem:[%s2849_s2 + $0x98] sm:$0xff]   ;;  %v2095_v33 = vld [vmem:[%s2849_s2 + $0x90] sm:$0xff]  }
 0x1e9   : > { %2202 = vrcp.f32 %v675_v35  ;;  %v673_v42 = vadd.f32 1.0, %v2181_v38  ;;  %v609_v43 = vpop.f32.mrf.mxu1  ;;  %1968 = vmatpush3.bf16.msra.mxu1 %v2090_v28  ;;  %v2096_v35 = vld [vmem:[%s2849_s2 + $0x88] sm:$0xff]   ;;  %v2097_v37 = vld [vmem:[%s2849_s2 + $0x80] sm:$0xff]  }
 0x1ea   : > { %v2183_v44 = vpop.eup %2182  ;;  %2204 = vpow2.f32 %v665_v39  ;;  %v661_v45 = vmul.f32 1.442695, %v633_v40  ;;  %v636_v46 = vsub.f32 0.0, %v618_v41  ;;  %v610_v47 = vadd.f32 %v2654_v36, %v609_v43  ;;  %1969 = vmatprep.subr.bf16.mxu1 %v2091_v29  ;;  %v2699_v38 = vld [vmem:[%s2850_s3 + $0x2] ss:$0 sm:$0xff] }
 0x1eb   : > { %2206 = vrcp.f32 %v673_v42  ;;  %v676_v48 = vadd.f32 1.0, %v2183_v44 }
 0x1ec   : > { %v2185_v49 = vpop.eup %2184  ;;  %2208 = vpow2.f32 %v661_v45  ;;  %v667_v50 = vmul.f32 1.442695, %v636_v46  ;;  %v634_v51 = vsub.f32 0.0, %v610_v47 }
 0x1ed   : > { %2210 = vrcp.f32 %v676_v48  ;;  %v674_v52 = vadd.f32 1.0, %v2185_v49  ;;  %1970 = vmatpush3.bf16.msra.mxu1 %v2091_v29 }
 0x1ee   : > { %v2187_v53 = vpop.eup %2186  ;;  %2212 = vpow2.f32 %v667_v50  ;;  %v663_v54 = vmul.f32 1.442695, %v634_v51  ;;  %1971 = vmatprep.subr.bf16.mxu1 %v2092_v30 }
 0x1ef   : > { %v2189_v55 = vpop.eup %2188  ;;  %2214 = vrcp.f32 %v674_v52 }
 0x1f0   : > { %v2191_v34 = vpop.eup %2190  ;;  %2216 = vpow2.f32 %v663_v54  ;;  %v679_v62 = vadd.f32 1.0, %v2189_v55 }
 0x1f1   : > { %v2193_v56 = vpop.eup %2192  ;;  %1972 = vmatpush3.bf16.msra.mxu1 %v2092_v30 }
 0x1f2   : > { %v2195_v57 = vpop.eup %2194  ;;  %v677_v58 = vadd.f32 1.0, %v2193_v56  ;;  %1973 = vmatprep.subr.bf16.mxu1 %v2093_v31 }
 0x1f3   : > { %v2197_v59 = vpop.eup %2196  ;;  %v702_v2 = vpack.c.bf16 %v2195_v57, %v2187_v53 }
 0x1f4   : > { %v2199_v36 = vpop.eup %2198  ;;  %v680_v60 = vadd.f32 1.0, %v2197_v59  ;;  %2218 = vrcp.f32 %v677_v58 }
 0x1f5   : > { %v2201_v61 = vpop.eup %2200  ;;  %v701_v63 = vpack.c.bf16 %v2199_v36, %v2191_v34  ;;  %1974 = vmatpush3.bf16.msra.mxu1 %v2093_v31 }
 0x1f6   : > { %v2203_v0 = vpop.eup %2202  ;;  %v678_v1 = vadd.f32 1.0, %v2201_v61  ;;  %2220 = vrcp.f32 %v680_v60  ;;  %1975 = vmatprep.subr.bf16.mxu1 %v2094_v32 }
 0x1f7   : > { %v2205_v3 = vpop.eup %2204  ;;  %1951 = vmatprep.mubr.bf16.mxu0 %v701_v63 }
 0x1f8   : > { %v2207_v4 = vpop.eup %2206  ;;  %2222 = vrcp.f32 %v678_v1  ;;  %1952 = vmatmul.mubr.bf16.vlgmr.msra.gmra.mxu0 %v702_v2  ;;  %v683_v12 = vadd.f32 1.0, %v2205_v3 }
 0x1f9   : > { %v2209_v5 = vpop.eup %2208  ;;  %2224 = vrcp.f32 %v679_v62  ;;  %1976 = vmatpush3.bf16.msra.mxu1 %v2094_v32 }
 0x1fa   : > { %v2211_v6 = vpop.eup %2210  ;;  %v681_v7 = vadd.f32 1.0, %v2209_v5  ;;  %1977 = vmatprep.subr.bf16.mxu1 %v2095_v33 }
 0x1fb   : > { %v2213_v8 = vpop.eup %2212  ;;  %v704_v15 = vpack.c.bf16 %v2211_v6, %v2203_v0 }
 0x1fc   : > { %v2215_v9 = vpop.eup %2214  ;;  %v684_v10 = vadd.f32 1.0, %v2213_v8  ;;  %2226 = vrcp.f32 %v681_v7 }
 0x1fd   : > { %v2217_v11 = vpop.eup %2216  ;;  %v703_v13 = vpack.c.bf16 %v2215_v9, %v2207_v4  ;;  %1978 = vmatpush3.bf16.msra.mxu1 %v2095_v33 }
 0x1fe   : > { %v682_v14 = vadd.f32 1.0, %v2217_v11  ;;  %2228 = vrcp.f32 %v684_v10  ;;  %1979 = vmatprep.subr.bf16.mxu1 %v2096_v35 }
 0x1ff   : > { %1955 = vmatprep.mubr.bf16.mxu0 %v703_v13 }
 0x200   : > { %2230 = vrcp.f32 %v682_v14  ;;  %1956 = vmatmul.mubr.bf16.gmra.mxu0 %v704_v15 }
 0x201   : > { %2232 = vrcp.f32 %v683_v12  ;;  %v2219_v16 = vpop.eup %2218  ;;  %1980 = vmatpush3.bf16.msra.mxu1 %v2096_v35 }
 0x202   : > { %1981 = vmatprep.subr.bf16.mxu1 %v2097_v37 }
 0x203   : > { %v2221_v17 = vpop.eup %2220 }
 0x205   : > { %v2223_v18 = vpop.eup %2222  ;;  %1982 = vmatpush3.bf16.msra.mxu1 %v2097_v37 }
 0x206   : > { %v2225_v19 = vpop.eup %2224  ;;  %v705_v20 = vpack.c.bf16 %v2223_v18, %v2219_v16 }
 0x207   : > { %v706_v21 = vpack.c.bf16 %v2221_v17, %v2225_v19 }
 0x208   : > { %1959 = vmatprep.mubr.bf16.mxu0 %v705_v20 }
 0x209   : > { %1960 = vmatmul.mubr.bf16.gmra.mxu0 %v706_v21  ;;  %v2227_v22 = vpop.eup %2226 }
 0x20b   : > { %v2229_v23 = vpop.eup %2228 }
 0x20d   : > { %v2231_v24 = vpop.eup %2230 }
 0x20e   : > { %v2233_v25 = vpop.eup %2232  ;;  %v707_v26 = vpack.c.bf16 %v2231_v24, %v2227_v22 }
 0x20f   : > { %v708_v27 = vpack.c.bf16 %v2229_v23, %v2233_v25 }
 0x210   : > { %1963 = vmatprep.mubr.bf16.mxu0 %v707_v26 }
 0x211   : > { %1964 = vmatmul.mubr.bf16.gmra.mxu0 %v708_v27 }
 0x2b8   : > { %v1953_v39 = vpop.f32.mrf.mxu0 }
 0x2b9   : > { %v822_v40 = vadd.f32 %v1953_v39, %v2699_v38 }
 0x2ba   : > { %v813_v41 = vpop.f32.mrf.mxu0 }
 0x2bb   : > { %v878_v42 = vsub.f32 0.0, %v822_v40  ;;  %v814_v43 = vadd.f32 %v2699_v38, %v813_v41 }
 0x2bc   : > { %v1954_v44 = vpop.f32.mrf.mxu0 }
 0x2bd   : > { %v896_v45 = vmul.f32 1.442695, %v878_v42  ;;  %v876_v46 = vsub.f32 0.0, %v814_v43  ;;  %v825_v47 = vadd.f32 %v1954_v44, %v2699_v38 }
 0x2be   : > { %v816_v48 = vpop.f32.mrf.mxu0 }
 0x2bf   : > { %2234 = vpow2.f32 %v896_v45  ;;  %v892_v49 = vmul.f32 1.442695, %v876_v46  ;;  %v879_v50 = vsub.f32 0.0, %v825_v47  ;;  %v817_v51 = vadd.f32 %v2699_v38, %v816_v48 }
 0x2c0   : > { %v1957_v52 = vpop.f32.mrf.mxu0 }
 0x2c1   : > { %2236 = vpow2.f32 %v892_v49  ;;  %v898_v53 = vmul.f32 1.442695, %v879_v50  ;;  %v877_v54 = vsub.f32 0.0, %v817_v51  ;;  %v838_v55 = vadd.f32 %v1957_v52, %v2699_v38 }
 0x2c2   : > { %v829_v34 = vpop.f32.mrf.mxu0 }
 0x2c3   : > { %2238 = vpow2.f32 %v898_v53  ;;  %v894_v56 = vmul.f32 1.442695, %v877_v54  ;;  %v882_v57 = vsub.f32 0.0, %v838_v55  ;;  %v830_v58 = vadd.f32 %v2699_v38, %v829_v34 }
 0x2c4   : > { %v1958_v59 = vpop.f32.mrf.mxu0 }
 0x2c5   : > { %2240 = vpow2.f32 %v894_v56  ;;  %v904_v36 = vmul.f32 1.442695, %v882_v57  ;;  %v880_v60 = vsub.f32 0.0, %v830_v58  ;;  %v841_v61 = vadd.f32 %v1958_v59, %v2699_v38 }
 0x2c6   : > { %v832_v62 = vpop.f32.mrf.mxu0 }
 0x2c7   : > { %2242 = vpow2.f32 %v904_v36  ;;  %v900_v63 = vmul.f32 1.442695, %v880_v60  ;;  %v883_v0 = vsub.f32 0.0, %v841_v61  ;;  %v833_v1 = vadd.f32 %v2699_v38, %v832_v62 }
 0x2c9   : > { %2244 = vpow2.f32 %v900_v63  ;;  %v906_v2 = vmul.f32 1.442695, %v883_v0  ;;  %v881_v3 = vsub.f32 0.0, %v833_v1  ;;  %v1961_v4 = vpop.f32.mrf.mxu0 }
 0x2ca   : > { %v854_v5 = vadd.f32 %v1961_v4, %v2699_v38 }
 0x2cb   : > { %2246 = vpow2.f32 %v906_v2  ;;  %v902_v6 = vmul.f32 1.442695, %v881_v3  ;;  %v845_v7 = vpop.f32.mrf.mxu0 }
 0x2cc   : > { %v2235_v8 = vpop.eup %2234  ;;  %v886_v9 = vsub.f32 0.0, %v854_v5  ;;  %v846_v10 = vadd.f32 %v2699_v38, %v845_v7 }
 0x2cd   : > { %v926_v11 = vadd.f32 1.0, %v2235_v8  ;;  %2248 = vpow2.f32 %v902_v6  ;;  %v1962_v12 = vpop.f32.mrf.mxu0 }
 0x2ce   : > { %v2237_v13 = vpop.eup %2236  ;;  %v912_v14 = vmul.f32 1.442695, %v886_v9  ;;  %v884_v15 = vsub.f32 0.0, %v846_v10  ;;  %v857_v16 = vadd.f32 %v1962_v12, %v2699_v38 }
 0x2cf   : > { %2250 = vrcp.f32 %v926_v11  ;;  %v924_v17 = vadd.f32 1.0, %v2237_v13  ;;  %v848_v18 = vpop.f32.mrf.mxu0 }
 0x2d0   : > { %v2239_v19 = vpop.eup %2238  ;;  %2252 = vpow2.f32 %v912_v14  ;;  %v908_v20 = vmul.f32 1.442695, %v884_v15  ;;  %v887_v21 = vsub.f32 0.0, %v857_v16  ;;  %v849_v22 = vadd.f32 %v2699_v38, %v848_v18 }
 0x2d1   : > { %2254 = vrcp.f32 %v924_v17  ;;  %v927_v23 = vadd.f32 1.0, %v2239_v19  ;;  %v1965_v24 = vpop.f32.mrf.mxu0 }
 0x2d2   : > { %v2241_v25 = vpop.eup %2240  ;;  %2256 = vpow2.f32 %v908_v20  ;;  %v914_v26 = vmul.f32 1.442695, %v887_v21  ;;  %v885_v27 = vsub.f32 0.0, %v849_v22  ;;  %v870_v28 = vadd.f32 %v1965_v24, %v2699_v38 }
 0x2d3   : > { %2258 = vrcp.f32 %v927_v23  ;;  %v925_v29 = vadd.f32 1.0, %v2241_v25  ;;  %v861_v30 = vpop.f32.mrf.mxu0 }
 0x2d4   : > { %v2243_v31 = vpop.eup %2242  ;;  %2260 = vpow2.f32 %v914_v26  ;;  %v910_v32 = vmul.f32 1.442695, %v885_v27  ;;  %v890_v33 = vsub.f32 0.0, %v870_v28  ;;  %v862_v35 = vadd.f32 %v2699_v38, %v861_v30  ;;  %v2099_v30 = vld [vmem:[%s2849_s2 + $0xf0] sm:$0xff]  }
 0x2d5   : > { %2262 = vrcp.f32 %v925_v29  ;;  %v930_v37 = vadd.f32 1.0, %v2243_v31  ;;  %v1966_v39 = vpop.f32.mrf.mxu0  ;;  %v2098_v29 = vld [vmem:[%s2849_s2 + $0xf8] sm:$0xff]   ;;  %v2100_v31 = vld [vmem:[%s2849_s2 + $0xe8] sm:$0xff]  }
 0x2d6   : > { %v2245_v40 = vpop.eup %2244  ;;  %2264 = vpow2.f32 %v910_v32  ;;  %v920_v41 = vmul.f32 1.442695, %v890_v33  ;;  %v888_v42 = vsub.f32 0.0, %v862_v35  ;;  %v873_v43 = vadd.f32 %v1966_v39, %v2699_v38  ;;  %1999 = vmatprep.subr.bf16.mxu0 %v2098_v29  ;;  %v2101_v32 = vld [vmem:[%s2849_s2 + $0xe0] sm:$0xff]   ;;  %v2102_v33 = vld [vmem:[%s2849_s2 + $0xd8] sm:$0xff]   ;;  %v2103_v35 = vld [vmem:[%s2849_s2 + $0xd0] sm:$0xff]  }
 0x2d7   : > { %2266 = vrcp.f32 %v930_v37  ;;  %v928_v44 = vadd.f32 1.0, %v2245_v40  ;;  %v864_v45 = vpop.f32.mrf.mxu0  ;;  %2000 = vmatpush3.bf16.msra.mxu0 %v2098_v29  ;;  %v2104_v37 = vld [vmem:[%s2849_s2 + $0xc8] sm:$0xff]   ;;  %v2105_v39 = vld [vmem:[%s2849_s2 + $0xc0] sm:$0xff]  }
 0x2d8   : > { %v2247_v46 = vpop.eup %2246  ;;  %2268 = vpow2.f32 %v920_v41  ;;  %v916_v47 = vmul.f32 1.442695, %v888_v42  ;;  %v891_v48 = vsub.f32 0.0, %v873_v43  ;;  %v865_v49 = vadd.f32 %v2699_v38, %v864_v45  ;;  %2001 = vmatprep.subr.bf16.mxu0 %v2099_v30  ;;  %v2744_v40 = vld [vmem:[%s2850_s3 + $0x3] ss:$0 sm:$0xff] }
 0x2d9   : > { %2270 = vrcp.f32 %v928_v44  ;;  %v931_v50 = vadd.f32 1.0, %v2247_v46 }
 0x2da   : > { %v2249_v51 = vpop.eup %2248  ;;  %2272 = vpow2.f32 %v916_v47  ;;  %v922_v52 = vmul.f32 1.442695, %v891_v48  ;;  %v889_v53 = vsub.f32 0.0, %v865_v49 }
 0x2db   : > { %2274 = vrcp.f32 %v931_v50  ;;  %v929_v54 = vadd.f32 1.0, %v2249_v51  ;;  %2002 = vmatpush3.bf16.msra.mxu0 %v2099_v30 }
 0x2dc   : > { %v2251_v55 = vpop.eup %2250  ;;  %2276 = vpow2.f32 %v922_v52  ;;  %v918_v34 = vmul.f32 1.442695, %v889_v53  ;;  %2003 = vmatprep.subr.bf16.mxu0 %v2100_v31 }
 0x2dd   : > { %v2253_v56 = vpop.eup %2252  ;;  %2278 = vrcp.f32 %v929_v54 }
 0x2de   : > { %v2255_v57 = vpop.eup %2254  ;;  %2280 = vpow2.f32 %v918_v34  ;;  %v934_v63 = vadd.f32 1.0, %v2253_v56 }
 0x2df   : > { %v2257_v58 = vpop.eup %2256  ;;  %2004 = vmatpush3.bf16.msra.mxu0 %v2100_v31 }
 0x2e0   : > { %v2259_v59 = vpop.eup %2258  ;;  %v932_v36 = vadd.f32 1.0, %v2257_v58  ;;  %2005 = vmatprep.subr.bf16.mxu0 %v2101_v32 }
 0x2e1   : > { %v2261_v60 = vpop.eup %2260  ;;  %v957_v3 = vpack.c.bf16 %v2259_v59, %v2251_v55 }
 0x2e2   : > { %v2263_v38 = vpop.eup %2262  ;;  %v935_v61 = vadd.f32 1.0, %v2261_v60  ;;  %2282 = vrcp.f32 %v932_v36 }
 0x2e3   : > { %v2265_v62 = vpop.eup %2264  ;;  %v956_v0 = vpack.c.bf16 %v2263_v38, %v2255_v57  ;;  %2006 = vmatpush3.bf16.msra.mxu0 %v2101_v32 }
 0x2e4   : > { %v2267_v1 = vpop.eup %2266  ;;  %v933_v2 = vadd.f32 1.0, %v2265_v62  ;;  %2284 = vrcp.f32 %v935_v61  ;;  %2007 = vmatprep.subr.bf16.mxu0 %v2102_v33 }
 0x2e5   : > { %v2269_v4 = vpop.eup %2268  ;;  %1983 = vmatprep.mubr.bf16.mxu1 %v956_v0 }
 0x2e6   : > { %v2271_v5 = vpop.eup %2270  ;;  %2286 = vrcp.f32 %v933_v2  ;;  %1984 = vmatmul.mubr.bf16.vlgmr.msra.gmra.mxu1 %v957_v3  ;;  %v938_v13 = vadd.f32 1.0, %v2269_v4 }
 0x2e7   : > { %v2273_v6 = vpop.eup %2272  ;;  %2288 = vrcp.f32 %v934_v63  ;;  %2008 = vmatpush3.bf16.msra.mxu0 %v2102_v33 }
 0x2e8   : > { %v2275_v7 = vpop.eup %2274  ;;  %v936_v8 = vadd.f32 1.0, %v2273_v6  ;;  %2009 = vmatprep.subr.bf16.mxu0 %v2103_v35 }
 0x2e9   : > { %v2277_v9 = vpop.eup %2276  ;;  %v959_v16 = vpack.c.bf16 %v2275_v7, %v2267_v1 }
 0x2ea   : > { %v2279_v10 = vpop.eup %2278  ;;  %v939_v11 = vadd.f32 1.0, %v2277_v9  ;;  %2290 = vrcp.f32 %v936_v8 }
 0x2eb   : > { %v2281_v12 = vpop.eup %2280  ;;  %v958_v14 = vpack.c.bf16 %v2279_v10, %v2271_v5  ;;  %2010 = vmatpush3.bf16.msra.mxu0 %v2103_v35 }
 0x2ec   : > { %v937_v15 = vadd.f32 1.0, %v2281_v12  ;;  %2292 = vrcp.f32 %v939_v11  ;;  %2011 = vmatprep.subr.bf16.mxu0 %v2104_v37 }
 0x2ed   : > { %1987 = vmatprep.mubr.bf16.mxu1 %v958_v14 }
 0x2ee   : > { %2294 = vrcp.f32 %v937_v15  ;;  %1988 = vmatmul.mubr.bf16.gmra.mxu1 %v959_v16 }
 0x2ef   : > { %2296 = vrcp.f32 %v938_v13  ;;  %v2283_v17 = vpop.eup %2282  ;;  %2012 = vmatpush3.bf16.msra.mxu0 %v2104_v37 }
 0x2f0   : > { %2013 = vmatprep.subr.bf16.mxu0 %v2105_v39 }
 0x2f1   : > { %v2285_v18 = vpop.eup %2284 }
 0x2f3   : > { %v2287_v19 = vpop.eup %2286  ;;  %2014 = vmatpush3.bf16.msra.mxu0 %v2105_v39 }
 0x2f4   : > { %v2289_v20 = vpop.eup %2288  ;;  %v960_v21 = vpack.c.bf16 %v2287_v19, %v2283_v17 }
 0x2f5   : > { %v961_v22 = vpack.c.bf16 %v2285_v18, %v2289_v20 }
 0x2f6   : > { %1991 = vmatprep.mubr.bf16.mxu1 %v960_v21 }
 0x2f7   : > { %1992 = vmatmul.mubr.bf16.gmra.mxu1 %v961_v22  ;;  %v2291_v23 = vpop.eup %2290 }
 0x2f9   : > { %v2293_v24 = vpop.eup %2292 }
 0x2fb   : > { %v2295_v25 = vpop.eup %2294 }
 0x2fc   : > { %v2297_v26 = vpop.eup %2296  ;;  %v962_v27 = vpack.c.bf16 %v2295_v25, %v2291_v23 }
 0x2fd   : > { %v963_v28 = vpack.c.bf16 %v2293_v24, %v2297_v26 }
 0x2fe   : > { %1995 = vmatprep.mubr.bf16.mxu1 %v962_v27 }
 0x2ff   : > { %1996 = vmatmul.mubr.bf16.gmra.mxu1 %v963_v28 }
 0x3a6   : > { %v1985_v41 = vpop.f32.mrf.mxu1 }
 0x3a7   : > { %v1077_v42 = vadd.f32 %v1985_v41, %v2744_v40 }
 0x3a8   : > { %v1068_v43 = vpop.f32.mrf.mxu1 }
 0x3a9   : > { %v1133_v44 = vsub.f32 0.0, %v1077_v42  ;;  %v1069_v45 = vadd.f32 %v2744_v40, %v1068_v43 }
 0x3aa   : > { %v1986_v46 = vpop.f32.mrf.mxu1 }
 0x3ab   : > { %v1151_v47 = vmul.f32 1.442695, %v1133_v44  ;;  %v1131_v48 = vsub.f32 0.0, %v1069_v45  ;;  %v1080_v49 = vadd.f32 %v1986_v46, %v2744_v40 }
 0x3ac   : > { %v1071_v50 = vpop.f32.mrf.mxu1 }
 0x3ad   : > { %2298 = vpow2.f32 %v1151_v47  ;;  %v1147_v51 = vmul.f32 1.442695, %v1131_v48  ;;  %v1134_v52 = vsub.f32 0.0, %v1080_v49  ;;  %v1072_v53 = vadd.f32 %v2744_v40, %v1071_v50 }
 0x3ae   : > { %v1989_v54 = vpop.f32.mrf.mxu1 }
 0x3af   : > { %2300 = vpow2.f32 %v1147_v51  ;;  %v1153_v55 = vmul.f32 1.442695, %v1134_v52  ;;  %v1132_v34 = vsub.f32 0.0, %v1072_v53  ;;  %v1093_v56 = vadd.f32 %v1989_v54, %v2744_v40 }
 0x3b0   : > { %v1084_v57 = vpop.f32.mrf.mxu1 }
 0x3b1   : > { %2302 = vpow2.f32 %v1153_v55  ;;  %v1149_v58 = vmul.f32 1.442695, %v1132_v34  ;;  %v1137_v59 = vsub.f32 0.0, %v1093_v56  ;;  %v1085_v36 = vadd.f32 %v2744_v40, %v1084_v57 }
 0x3b2   : > { %v1990_v60 = vpop.f32.mrf.mxu1 }
 0x3b3   : > { %2304 = vpow2.f32 %v1149_v58  ;;  %v1159_v38 = vmul.f32 1.442695, %v1137_v59  ;;  %v1135_v61 = vsub.f32 0.0, %v1085_v36  ;;  %v1096_v62 = vadd.f32 %v1990_v60, %v2744_v40 }
 0x3b4   : > { %v1087_v63 = vpop.f32.mrf.mxu1 }
 0x3b5   : > { %2306 = vpow2.f32 %v1159_v38  ;;  %v1155_v0 = vmul.f32 1.442695, %v1135_v61  ;;  %v1138_v1 = vsub.f32 0.0, %v1096_v62  ;;  %v1088_v2 = vadd.f32 %v2744_v40, %v1087_v63 }
 0x3b7   : > { %2308 = vpow2.f32 %v1155_v0  ;;  %v1161_v3 = vmul.f32 1.442695, %v1138_v1  ;;  %v1136_v4 = vsub.f32 0.0, %v1088_v2  ;;  %v1993_v5 = vpop.f32.mrf.mxu1 }
 0x3b8   : > { %v1109_v6 = vadd.f32 %v1993_v5, %v2744_v40 }
 0x3b9   : > { %2310 = vpow2.f32 %v1161_v3  ;;  %v1157_v7 = vmul.f32 1.442695, %v1136_v4  ;;  %v1100_v8 = vpop.f32.mrf.mxu1 }
 0x3ba   : > { %v2299_v9 = vpop.eup %2298  ;;  %v1141_v10 = vsub.f32 0.0, %v1109_v6  ;;  %v1101_v11 = vadd.f32 %v2744_v40, %v1100_v8 }
 0x3bb   : > { %v1181_v12 = vadd.f32 1.0, %v2299_v9  ;;  %2312 = vpow2.f32 %v1157_v7  ;;  %v1994_v13 = vpop.f32.mrf.mxu1 }
 0x3bc   : > { %v2301_v14 = vpop.eup %2300  ;;  %v1167_v15 = vmul.f32 1.442695, %v1141_v10  ;;  %v1139_v16 = vsub.f32 0.0, %v1101_v11  ;;  %v1112_v17 = vadd.f32 %v1994_v13, %v2744_v40 }
 0x3bd   : > { %2314 = vrcp.f32 %v1181_v12  ;;  %v1179_v18 = vadd.f32 1.0, %v2301_v14  ;;  %v1103_v19 = vpop.f32.mrf.mxu1 }
 0x3be   : > { %v2303_v20 = vpop.eup %2302  ;;  %2316 = vpow2.f32 %v1167_v15  ;;  %v1163_v21 = vmul.f32 1.442695, %v1139_v16  ;;  %v1142_v22 = vsub.f32 0.0, %v1112_v17  ;;  %v1104_v23 = vadd.f32 %v2744_v40, %v1103_v19 }
 0x3bf   : > { %2318 = vrcp.f32 %v1179_v18  ;;  %v1182_v24 = vadd.f32 1.0, %v2303_v20  ;;  %v1997_v25 = vpop.f32.mrf.mxu1 }
 0x3c0   : > { %v2305_v26 = vpop.eup %2304  ;;  %2320 = vpow2.f32 %v1163_v21  ;;  %v1169_v27 = vmul.f32 1.442695, %v1142_v22  ;;  %v1140_v28 = vsub.f32 0.0, %v1104_v23  ;;  %v1125_v29 = vadd.f32 %v1997_v25, %v2744_v40 }
 0x3c1   : > { %2322 = vrcp.f32 %v1182_v24  ;;  %v1180_v30 = vadd.f32 1.0, %v2305_v26  ;;  %v1116_v31 = vpop.f32.mrf.mxu1 }
 0x3c2   : > { %v2307_v32 = vpop.eup %2306  ;;  %2324 = vpow2.f32 %v1169_v27  ;;  %v1165_v33 = vmul.f32 1.442695, %v1140_v28  ;;  %v1145_v35 = vsub.f32 0.0, %v1125_v29  ;;  %v1117_v37 = vadd.f32 %v2744_v40, %v1116_v31 }
 0x3c3   : > { %2326 = vrcp.f32 %v1180_v30  ;;  %v1185_v39 = vadd.f32 1.0, %v2307_v32  ;;  %v1998_v41 = vpop.f32.mrf.mxu1  ;;  %v2765_v30 = vld [vmem:[%s2850_s3 + $0x4] ss:$0 sm:$0xff] }
 0x3c4   : > { %v2309_v42 = vpop.eup %2308  ;;  %2328 = vpow2.f32 %v1165_v33  ;;  %v1175_v43 = vmul.f32 1.442695, %v1145_v35  ;;  %v1143_v44 = vsub.f32 0.0, %v1117_v37  ;;  %v1128_v45 = vadd.f32 %v1998_v41, %v2744_v40 }
 0x3c5   : > { %2330 = vrcp.f32 %v1185_v39  ;;  %v1183_v46 = vadd.f32 1.0, %v2309_v42  ;;  %v1119_v47 = vpop.f32.mrf.mxu1 }
 0x3c6   : > { %v2311_v48 = vpop.eup %2310  ;;  %2332 = vpow2.f32 %v1175_v43  ;;  %v1171_v49 = vmul.f32 1.442695, %v1143_v44  ;;  %v1146_v50 = vsub.f32 0.0, %v1128_v45  ;;  %v1120_v51 = vadd.f32 %v2744_v40, %v1119_v47 }
 0x3c7   : > { %2334 = vrcp.f32 %v1183_v46  ;;  %v1186_v52 = vadd.f32 1.0, %v2311_v48 }
 0x3c8   : > { %v2313_v53 = vpop.eup %2312  ;;  %2336 = vpow2.f32 %v1171_v49  ;;  %v1177_v54 = vmul.f32 1.442695, %v1146_v50  ;;  %v1144_v55 = vsub.f32 0.0, %v1120_v51 }
 0x3c9   : > { %2338 = vrcp.f32 %v1186_v52  ;;  %v1184_v34 = vadd.f32 1.0, %v2313_v53 }
 0x3ca   : > { %v2315_v56 = vpop.eup %2314  ;;  %2340 = vpow2.f32 %v1177_v54  ;;  %v1173_v57 = vmul.f32 1.442695, %v1144_v55 }
 0x3cb   : > { %v2317_v58 = vpop.eup %2316  ;;  %2342 = vrcp.f32 %v1184_v34 }
 0x3cc   : > { %v2319_v59 = vpop.eup %2318  ;;  %2344 = vpow2.f32 %v1173_v57  ;;  %v1189_v0 = vadd.f32 1.0, %v2317_v58 }
 0x3cd   : > { %v2321_v36 = vpop.eup %2320 }
 0x3ce   : > { %v2323_v60 = vpop.eup %2322  ;;  %v1187_v38 = vadd.f32 1.0, %v2321_v36 }
 0x3cf   : > { %v2325_v61 = vpop.eup %2324  ;;  %v1212_v4 = vpack.c.bf16 %v2323_v60, %v2315_v56 }
 0x3d0   : > { %v2327_v40 = vpop.eup %2326  ;;  %v1190_v62 = vadd.f32 1.0, %v2325_v61  ;;  %2346 = vrcp.f32 %v1187_v38 }
 0x3d1   : > { %v2329_v63 = vpop.eup %2328  ;;  %v1211_v1 = vpack.c.bf16 %v2327_v40, %v2319_v59 }
 0x3d2   : > { %v2331_v2 = vpop.eup %2330  ;;  %v1188_v3 = vadd.f32 1.0, %v2329_v63  ;;  %2348 = vrcp.f32 %v1190_v62 }
 0x3d3   : > { %v2333_v5 = vpop.eup %2332  ;;  %2015 = vmatprep.mubr.bf16.mxu0 %v1211_v1 }
 0x3d4   : > { %v2335_v6 = vpop.eup %2334  ;;  %2350 = vrcp.f32 %v1188_v3  ;;  %2016 = vmatmul.mubr.bf16.vlgmr.msra.gmra.mxu0 %v1212_v4  ;;  %v1193_v14 = vadd.f32 1.0, %v2333_v5 }
 0x3d5   : > { %v2337_v7 = vpop.eup %2336  ;;  %2352 = vrcp.f32 %v1189_v0 }
 0x3d6   : > { %v2339_v8 = vpop.eup %2338  ;;  %v1191_v9 = vadd.f32 1.0, %v2337_v7 }
 0x3d7   : > { %v2341_v10 = vpop.eup %2340  ;;  %v1214_v17 = vpack.c.bf16 %v2339_v8, %v2331_v2 }
 0x3d8   : > { %v2343_v11 = vpop.eup %2342  ;;  %v1194_v12 = vadd.f32 1.0, %v2341_v10  ;;  %2354 = vrcp.f32 %v1191_v9 }
 0x3d9   : > { %v2345_v13 = vpop.eup %2344  ;;  %v1213_v15 = vpack.c.bf16 %v2343_v11, %v2335_v6 }
 0x3da   : > { %v1192_v16 = vadd.f32 1.0, %v2345_v13  ;;  %2356 = vrcp.f32 %v1194_v12 }
 0x3db   : > { %2019 = vmatprep.mubr.bf16.mxu0 %v1213_v15 }
 0x3dc   : > { %2358 = vrcp.f32 %v1192_v16  ;;  %2020 = vmatmul.mubr.bf16.gmra.mxu0 %v1214_v17 }
 0x3dd   : > { %2360 = vrcp.f32 %v1193_v14  ;;  %v2347_v18 = vpop.eup %2346 }
 0x3df   : > { %v2349_v19 = vpop.eup %2348 }
 0x3e1   : > { %v2351_v20 = vpop.eup %2350 }
 0x3e2   : > { %v2353_v21 = vpop.eup %2352  ;;  %v1215_v22 = vpack.c.bf16 %v2351_v20, %v2347_v18 }
 0x3e3   : > { %v1216_v23 = vpack.c.bf16 %v2349_v19, %v2353_v21 }
 0x3e4   : > { %2023 = vmatprep.mubr.bf16.mxu0 %v1215_v22 }
 0x3e5   : > { %2024 = vmatmul.mubr.bf16.gmra.mxu0 %v1216_v23  ;;  %v2355_v24 = vpop.eup %2354 }
 0x3e7   : > { %v2357_v25 = vpop.eup %2356 }
 0x3e9   : > { %v2359_v26 = vpop.eup %2358 }
 0x3ea   : > { %v2361_v27 = vpop.eup %2360  ;;  %v1217_v28 = vpack.c.bf16 %v2359_v26, %v2355_v24 }
 0x3eb   : > { %v1218_v29 = vpack.c.bf16 %v2357_v25, %v2361_v27 }
 0x3ec   : > { %2027 = vmatprep.mubr.bf16.mxu0 %v1217_v28 }
 0x3ed   : > { %2028 = vmatmul.mubr.bf16.gmra.mxu0 %v1218_v29 }
 0x494   : > { %v2017_v31 = vpop.f32.mrf.mxu0 }
 0x495   : > { %v1332_v32 = vadd.f32 %v2017_v31, %v2765_v30 }
 0x496   : > { %v1323_v33 = vpop.f32.mrf.mxu0 }
 0x497   : > { %v1388_v35 = vsub.f32 0.0, %v1332_v32  ;;  %v1324_v37 = vadd.f32 %v2765_v30, %v1323_v33 }
 0x498   : > { %v2018_v39 = vpop.f32.mrf.mxu0 }
 0x499   : > { %v1406_v41 = vmul.f32 1.442695, %v1388_v35  ;;  %v1386_v42 = vsub.f32 0.0, %v1324_v37  ;;  %v1335_v43 = vadd.f32 %v2018_v39, %v2765_v30 }
 0x49a   : > { %v1326_v44 = vpop.f32.mrf.mxu0 }
 0x49b   : > { %2362 = vpow2.f32 %v1406_v41  ;;  %v1402_v45 = vmul.f32 1.442695, %v1386_v42  ;;  %v1389_v46 = vsub.f32 0.0, %v1335_v43  ;;  %v1327_v47 = vadd.f32 %v2765_v30, %v1326_v44 }
 0x49c   : > { %v2021_v48 = vpop.f32.mrf.mxu0 }
 0x49d   : > { %2364 = vpow2.f32 %v1402_v45  ;;  %v1408_v49 = vmul.f32 1.442695, %v1389_v46  ;;  %v1387_v50 = vsub.f32 0.0, %v1327_v47  ;;  %v1348_v51 = vadd.f32 %v2021_v48, %v2765_v30 }
 0x49e   : > { %v1339_v52 = vpop.f32.mrf.mxu0 }
 0x49f   : > { %2366 = vpow2.f32 %v1408_v49  ;;  %v1404_v53 = vmul.f32 1.442695, %v1387_v50  ;;  %v1392_v54 = vsub.f32 0.0, %v1348_v51  ;;  %v1340_v55 = vadd.f32 %v2765_v30, %v1339_v52 }
 0x4a0   : > { %v2022_v34 = vpop.f32.mrf.mxu0 }
 0x4a1   : > { %2368 = vpow2.f32 %v1404_v53  ;;  %v1414_v56 = vmul.f32 1.442695, %v1392_v54  ;;  %v1390_v57 = vsub.f32 0.0, %v1340_v55  ;;  %v1351_v58 = vadd.f32 %v2022_v34, %v2765_v30 }
 0x4a2   : > { %v1342_v59 = vpop.f32.mrf.mxu0 }
 0x4a3   : > { %2370 = vpow2.f32 %v1414_v56  ;;  %v1410_v36 = vmul.f32 1.442695, %v1390_v57  ;;  %v1393_v60 = vsub.f32 0.0, %v1351_v58  ;;  %v1343_v38 = vadd.f32 %v2765_v30, %v1342_v59 }
 0x4a5   : > { %2372 = vpow2.f32 %v1410_v36  ;;  %v1416_v61 = vmul.f32 1.442695, %v1393_v60  ;;  %v1391_v40 = vsub.f32 0.0, %v1343_v38  ;;  %v2025_v62 = vpop.f32.mrf.mxu0 }
 0x4a6   : > { %v1364_v63 = vadd.f32 %v2025_v62, %v2765_v30 }
 0x4a7   : > { %2374 = vpow2.f32 %v1416_v61  ;;  %v1412_v0 = vmul.f32 1.442695, %v1391_v40  ;;  %v1355_v1 = vpop.f32.mrf.mxu0 }
 0x4a8   : > { %v2363_v2 = vpop.eup %2362  ;;  %v1396_v3 = vsub.f32 0.0, %v1364_v63  ;;  %v1356_v4 = vadd.f32 %v2765_v30, %v1355_v1 }
 0x4a9   : > { %v1436_v5 = vadd.f32 1.0, %v2363_v2  ;;  %2376 = vpow2.f32 %v1412_v0  ;;  %v2026_v6 = vpop.f32.mrf.mxu0 }
 0x4aa   : > { %v2365_v7 = vpop.eup %2364  ;;  %v1422_v8 = vmul.f32 1.442695, %v1396_v3  ;;  %v1394_v9 = vsub.f32 0.0, %v1356_v4  ;;  %v1367_v10 = vadd.f32 %v2026_v6, %v2765_v30 }
 0x4ab   : > { %2378 = vrcp.f32 %v1436_v5  ;;  %v1434_v11 = vadd.f32 1.0, %v2365_v7  ;;  %v1358_v12 = vpop.f32.mrf.mxu0 }
 0x4ac   : > { %v2367_v13 = vpop.eup %2366  ;;  %2380 = vpow2.f32 %v1422_v8  ;;  %v1418_v14 = vmul.f32 1.442695, %v1394_v9  ;;  %v1397_v15 = vsub.f32 0.0, %v1367_v10  ;;  %v1359_v16 = vadd.f32 %v2765_v30, %v1358_v12 }
 0x4ad   : > { %2382 = vrcp.f32 %v1434_v11  ;;  %v1437_v17 = vadd.f32 1.0, %v2367_v13  ;;  %v2029_v18 = vpop.f32.mrf.mxu0 }
 0x4ae   : > { %v2369_v19 = vpop.eup %2368  ;;  %2384 = vpow2.f32 %v1418_v14  ;;  %v1424_v20 = vmul.f32 1.442695, %v1397_v15  ;;  %v1395_v21 = vsub.f32 0.0, %v1359_v16  ;;  %v1380_v22 = vadd.f32 %v2029_v18, %v2765_v30 }
 0x4af   : > { %2386 = vrcp.f32 %v1437_v17  ;;  %v1435_v23 = vadd.f32 1.0, %v2369_v19  ;;  %v1371_v24 = vpop.f32.mrf.mxu0 }
 0x4b0   : > { %v2371_v25 = vpop.eup %2370  ;;  %2388 = vpow2.f32 %v1424_v20  ;;  %v1420_v26 = vmul.f32 1.442695, %v1395_v21  ;;  %v1400_v27 = vsub.f32 0.0, %v1380_v22  ;;  %v1372_v28 = vadd.f32 %v2765_v30, %v1371_v24 }
 0x4b1   : > { %2390 = vrcp.f32 %v1435_v23  ;;  %v1440_v29 = vadd.f32 1.0, %v2371_v25  ;;  %v2030_v31 = vpop.f32.mrf.mxu0 }
 0x4b2   : > { %v2373_v32 = vpop.eup %2372  ;;  %2392 = vpow2.f32 %v1420_v26  ;;  %v1430_v33 = vmul.f32 1.442695, %v1400_v27  ;;  %v1398_v35 = vsub.f32 0.0, %v1372_v28  ;;  %v1383_v37 = vadd.f32 %v2030_v31, %v2765_v30 }
 0x4b3   : > { %2394 = vrcp.f32 %v1440_v29  ;;  %v1438_v39 = vadd.f32 1.0, %v2373_v32  ;;  %v1374_v41 = vpop.f32.mrf.mxu0 }
 0x4b4   : > { %v2375_v42 = vpop.eup %2374  ;;  %2396 = vpow2.f32 %v1430_v33  ;;  %v1426_v43 = vmul.f32 1.442695, %v1398_v35  ;;  %v1401_v44 = vsub.f32 0.0, %v1383_v37  ;;  %v1375_v45 = vadd.f32 %v2765_v30, %v1374_v41 }
 0x4b5   : > { %2398 = vrcp.f32 %v1438_v39  ;;  %v1441_v46 = vadd.f32 1.0, %v2375_v42 }
 0x4b6   : > { %v2377_v47 = vpop.eup %2376  ;;  %2400 = vpow2.f32 %v1426_v43  ;;  %v1432_v48 = vmul.f32 1.442695, %v1401_v44  ;;  %v1399_v49 = vsub.f32 0.0, %v1375_v45 }
 0x4b7   : > { %2402 = vrcp.f32 %v1441_v46  ;;  %v1439_v50 = vadd.f32 1.0, %v2377_v47 }
 0x4b8   : > { %v2379_v51 = vpop.eup %2378  ;;  %2404 = vpow2.f32 %v1432_v48  ;;  %v1428_v52 = vmul.f32 1.442695, %v1399_v49 }
 0x4b9   : > { %v2381_v53 = vpop.eup %2380  ;;  %2406 = vrcp.f32 %v1439_v50 }
 0x4ba   : > { %v2383_v54 = vpop.eup %2382  ;;  %2408 = vpow2.f32 %v1428_v52  ;;  %v1444_v30 = vadd.f32 1.0, %v2381_v53 }
 0x4bb   : > { %v2385_v55 = vpop.eup %2384 }
 0x4bc   : > { %v2387_v34 = vpop.eup %2386  ;;  %v1442_v58 = vadd.f32 1.0, %v2385_v55  ;;  %2410 = vrcp.f32 %v1444_v30 }
 0x4bd   : > { %v2389_v56 = vpop.eup %2388  ;;  %v1770_v57 = vpack.c.bf16 %v2387_v34, %v2379_v51 }
 0x4be   : > { %v2391_v59 = vpop.eup %2390  ;;  %v1445_v36 = vadd.f32 1.0, %v2389_v56 }
 0x4bf   : > { %v2393_v60 = vpop.eup %2392  ;;  %1802 = vst [vmem:[%s2786_s27 + $0x8] sm:$0xff] %v1770_v57   ;;  %v1765_v38 = vpack.c.bf16 %v2391_v59, %v2383_v54 }
 0x4c0   : > { %v2395_v61 = vpop.eup %2394  ;;  %2412 = vrcp.f32 %v1445_v36  ;;  %v1443_v40 = vadd.f32 1.0, %v2393_v60 }
 0x4c1   : > { %v2397_v62 = vpop.eup %2396  ;;  %1766 = vst [vmem:[%s2786_s27] sm:$0xff] %v1765_v38   ;;  %2414 = vrcp.f32 %v1442_v58 }
 0x4c2   : > { %v2399_v63 = vpop.eup %2398  ;;  %2416 = vrcp.f32 %v1443_v40  ;;  %v1448_v1 = vadd.f32 1.0, %v2397_v62 }
 0x4c3   : > { %v2401_v0 = vpop.eup %2400 }
 0x4c4   : > { %v2403_v2 = vpop.eup %2402  ;;  %v1446_v5 = vadd.f32 1.0, %v2401_v0  ;;  %2418 = vrcp.f32 %v1448_v1 }
 0x4c5   : > { %v2405_v3 = vpop.eup %2404  ;;  %v1780_v4 = vpack.c.bf16 %v2403_v2, %v2395_v61 }
 0x4c6   : > { %v2407_v6 = vpop.eup %2406  ;;  %v1449_v7 = vadd.f32 1.0, %v2405_v3 }
 0x4c7   : > { %v2409_v8 = vpop.eup %2408  ;;  %1804 = vst [vmem:[%s2786_s27 + $0x18] sm:$0xff] %v1780_v4   ;;  %v1775_v9 = vpack.c.bf16 %v2407_v6, %v2399_v63 }
 0x4c8   : > { %2420 = vrcp.f32 %v1449_v7  ;;  %v1447_v10 = vadd.f32 1.0, %v2409_v8 }
 0x4c9   : > { %1803 = vst [vmem:[%s2786_s27 + $0x10] sm:$0xff] %v1775_v9   ;;  %2422 = vrcp.f32 %v1446_v5  ;;  %v2411_v11 = vpop.eup %2410 }
 0x4ca   : > { %2424 = vrcp.f32 %v1447_v10 }
 0x4cd   : > { %v2413_v12 = vpop.eup %2412 }
 0x4ce   : > { %v2415_v13 = vpop.eup %2414  ;;  %v1790_v14 = vpack.c.bf16 %v2413_v12, %v2411_v11 }
 0x4cf   : > { %v2417_v15 = vpop.eup %2416 }
 0x4d0   : > { %1806 = vst [vmem:[%s2786_s27 + $0x28] sm:$0xff] %v1790_v14   ;;  %v1785_v16 = vpack.c.bf16 %v2417_v15, %v2415_v13 }
 0x4d1   : > { %v2419_v17 = vpop.eup %2418 }
 0x4d2   : > { %1805 = vst [vmem:[%s2786_s27 + $0x20] sm:$0xff] %v1785_v16  }
 0x4d5   : > { %v2421_v18 = vpop.eup %2420 }
 0x4d6   : > { %v2423_v19 = vpop.eup %2422  ;;  %v1800_v20 = vpack.c.bf16 %v2421_v18, %v2419_v17 }
 0x4d7   : > { %v2425_v21 = vpop.eup %2424 }
 0x4d8   : > { %1808 = vst [vmem:[%s2786_s27 + $0x38] sm:$0xff] %v1800_v20   ;;  %v1795_v22 = vpack.c.bf16 %v2425_v21, %v2423_v19 }
 0x4da   : > { %1807 = vst [vmem:[%s2786_s27 + $0x30] sm:$0xff] %v1795_v22  }
 0x4db   : > { %2439 = shalt.err (!%p2436_p3)
}
 0x4dc   : > { %s2440_s11 = scalar_lea.hbm %s2799_s6, 1024  ;;  %s2444_s14 = scalar_lea.hbm %s2851_s4, 2048 }
 0x4dd   : > { %p2441_p4 = scmp.ne.s32.totalorder %s2799_s6, %s2440_s11  ;;  %p2445_p9 = scmp.lt.s32.totalorder %s2799_s6, %s2851_s4 }
 0x4de   : > { %p2446_p10 = scmp.lt.s32.totalorder %s2444_s14, %s2440_s11 }
 0x4df   : > { %p2442_p7 = pnand %p2441_p4, %p2554_p5 }
 0x4e0   : > { %p2447_p11 = por %p2446_p10, %p2445_p9 }
 0x4e1   : > { %p2443_p8 = pneg %p2442_p7 }
 0x4e3   : > { %p2448_p12 = pnand %p2447_p11, %p2443_p8 }
 0x4e5   : > { %2451 = shalt.err (!%p2448_p12)
}
 0x4e6   : > { %s2489_s23 = smov 64   ;;  %s2490_s27 = smov 4  }
 0x4e7   : > { %2031 = dma.vmem_to_hbm [thread:$0]  (%p2554_p5), %s2801_s29, 1024, %s2799_s6, %s2807_s19, %s2489_s23, %s2489_s23, %s2490_s27  }
 0x4e8 PF: > { %p2037_p13 = scmp.ge.s32.totalorder %s2486_s18, 2  ;;  %s1575_s28 = sand.u32 1, %s2474_s15  }
 0x4e9   : > { %s1576_s30 = scalar_lea.sflag [#allocation3], %s1575_s28 }
 0x4ea   : > { %p2034_p0 = pnand %p2037_p13, %p2558_p6 }
 0x4ec   : > { %p2035_p1 = pneg %p2034_p0 }
 0x4ee   : > { %2469 = dma.done.wait (%p2035_p1), %s1576_s30, 1024  }
 0x4ef   : > { %2471 = vsyncadd (%p2035_p1), %s1576_s30, 4294966272  ;;  %p14_p2 = scmp.ge.s32.totalorder %s2541_s21, 4   ;;  %s2854_s15 = smov %s2478_s16 }
 0x4f0   : > { %s2855_s16 = smov %s2482_s17  ;;  %s2856_s17 = smov %s2552_s24 }
 0x4f1   : > { %s2857_s18 = smov %s2541_s21  ;;  %16 = sbr.rel (!%p14_p2) target bundleno = 3 (0x3), region = 74 }
 0x4f6   :  { %1581 = vsyncpa [#allocation3], 1 }
 0x4f7   :  { %1583 = vsyncpa [#allocation3 + $0x1], 1 }

</bundles_post_ra>
